<compile_context>
chip_gen: v7x
topology: tpu7x:2x2x1
jax: 0.10.0
libtpu: 0.0.40
codegen_flags: <defaults>
</compile_context>

<pallas_src>
import functools

import jax
import jax.numpy as jnp
from jax.experimental import pallas as pl
from jax.experimental.pallas import tpu as pltpu

# ----------------------------- model config (small) -----------------------------
VOCAB = 100
HIDDEN = 32
NUM_LAYERS = 2
NUM_HEADS = 2
HEAD_DIM = HIDDEN // NUM_HEADS
INTERMEDIATE = 64
MAX_POS = 16
N_CLASSES = 3
LN_EPS = 1e-12

_INV_SQRT2 = 0.7071067811865476


def _erf(x):
    """Abramowitz & Stegun 7.1.26 rational erf approximation (|err| < 1.5e-7).

    Uses only exp / mul / add / select so it always lowers on Mosaic
    (EUP + VALU), unlike lax.erf which may lack a TPU lowering rule.
    """
    a1, a2, a3, a4, a5 = (0.254829592, -0.284496736, 1.421413741,
                          -1.453152027, 1.061405429)
    p = 0.3275911
    ax = jnp.abs(x)
    t = 1.0 / (1.0 + p * ax)
    poly = ((((a5 * t + a4) * t + a3) * t + a2) * t + a1) * t
    y = 1.0 - poly * jnp.exp(-ax * ax)
    return jnp.where(x >= 0, y, -y)


# ----------------------------- fused Pallas kernel -------------------------------
def _bert_fused_kernel(emb_ref, mask_ref,
                       emb_ln_g_ref, emb_ln_b_ref,
                       qkv_w_ref, qkv_b_ref, ao_w_ref, ao_b_ref,
                       ln1_g_ref, ln1_b_ref,
                       ff1_w_ref, ff1_b_ref, ff2_w_ref, ff2_b_ref,
                       ln2_g_ref, ln2_b_ref,
                       pool_w_ref, pool_b_ref, out_w_ref, out_b_ref,
                       logits_ref,
                       ctx_ref, cls_ref,
                       *, batch, seq):
    """Whole BertClass forward. All refs live in VMEM; no grid."""

    def layernorm(x, g, b):
        mu = jnp.mean(x, axis=-1, keepdims=True)
        var = jnp.mean((x - mu) * (x - mu), axis=-1, keepdims=True)
        return (x - mu) * jax.lax.rsqrt(var + LN_EPS) * g + b

    def gelu(x):  # exact (erf) GELU, matching HF BERT's default activation
        return 0.5 * x * (1.0 + _erf(x * _INV_SQRT2))

    # --- embedding LayerNorm ---
    h = layernorm(emb_ref[...], emb_ln_g_ref[...], emb_ln_b_ref[...])   # (B*S, H)
    add_mask = mask_ref[...]                                            # (B, S)
    scale = 1.0 / float(HEAD_DIM) ** 0.5

    for l in range(NUM_LAYERS):                                         # unrolled
        # --- fused Q|K|V projection: one lane-dense (M, 3H) MXU pass ---
        qkv = jnp.dot(h, qkv_w_ref[l], preferred_element_type=jnp.float32) + qkv_b_ref[l]

        # --- self attention, all (batch, head) slices inside this kernel ---
        for b in range(batch):                                          # static
            r0 = b * seq
            m_b = add_mask[b:b + 1, :]                                  # (1, S) key mask
            for hh in range(NUM_HEADS):                                 # static
                c0 = hh * HEAD_DIM
                qb = qkv[r0:r0 + seq, c0:c0 + HEAD_DIM]
                kb = qkv[r0:r0 + seq, HIDDEN + c0:HIDDEN + c0 + HEAD_DIM]
                vb = qkv[r0:r0 + seq, 2 * HIDDEN + c0:2 * HIDDEN + c0 + HEAD_DIM]

                # q @ k^T without an explicit transpose (contract last dims).
                s = jax.lax.dot_general(
                    qb, kb, dimension_numbers=(((1,), (1,)), ((), ())),
                    preferred_element_type=jnp.float32) * scale + m_b
                s = s - jnp.max(s, axis=-1, keepdims=True)
                p = jnp.exp(s)
                p = p * pl.reciprocal(jnp.sum(p, axis=-1, keepdims=True), approx=True)
                ctx_ref[pl.ds(r0, seq), pl.ds(c0, HEAD_DIM)] = jnp.dot(
                    p, vb, preferred_element_type=jnp.float32)

        attn = jnp.dot(ctx_ref[...], ao_w_ref[l],
                       preferred_element_type=jnp.float32) + ao_b_ref[l]
        h = layernorm(attn + h, ln1_g_ref[l], ln1_b_ref[l])

        # --- feed forward ---
        ff = gelu(jnp.dot(h, ff1_w_ref[l],
                          preferred_element_type=jnp.float32) + ff1_b_ref[l])
        ff = jnp.dot(ff, ff2_w_ref[l],
                     preferred_element_type=jnp.float32) + ff2_b_ref[l]
        h = layernorm(ff + h, ln2_g_ref[l], ln2_b_ref[l])

    # --- pooler: tanh(Linear(CLS token)) ---
    for b in range(batch):                                              # static rows
        cls_ref[pl.ds(b, 1), :] = h[b * seq:b * seq + 1, :]
    pooled = jnp.tanh(jnp.dot(cls_ref[...], pool_w_ref[...],
                              preferred_element_type=jnp.float32) + pool_b_ref[...])

    # --- dropout(p=0.3) ---
    # TODO(synk): dropout is a stochastic train-time op; applied as identity (eval mode).

    # --- classification head ---
    logits_ref[...] = jnp.dot(pooled, out_w_ref[...],
                              preferred_element_type=jnp.float32) + out_b_ref[...]


# ----------------------------- parameter init -----------------------------------
def init_params(key):
    keys = iter(jax.random.split(key, 64))

    def w(shape):
        return (0.02 * jax.random.normal(next(keys), shape)).astype(jnp.float32)

    def zeros(shape):
        return jnp.zeros(shape, jnp.float32)

    def ones(shape):
        return jnp.ones(shape, jnp.float32)

    L, H, I = NUM_LAYERS, HIDDEN, INTERMEDIATE
    return {
        "word_emb": w((VOCAB, H)),
        "pos_emb": w((MAX_POS, H)),
        "type_emb": w((2, H)),
        "emb_ln_g": ones((1, H)),
        "emb_ln_b": zeros((1, H)),
        # per-layer weights stacked along a leading layer axis (Q|K|V fused)
        "qkv_w": w((L, H, 3 * H)),
        "qkv_b": zeros((L, 1, 3 * H)),
        "ao_w": w((L, H, H)),
        "ao_b": zeros((L, 1, H)),
        "ln1_g": ones((L, 1, H)),
        "ln1_b": zeros((L, 1, H)),
        "ff1_w": w((L, H, I)),
        "ff1_b": zeros((L, 1, I)),
        "ff2_w": w((L, I, H)),
        "ff2_b": zeros((L, 1, H)),
        "ln2_g": ones((L, 1, H)),
        "ln2_b": zeros((L, 1, H)),
        "pool_w": w((H, H)),
        "pool_b": zeros((1, H)),
        "out_w": w((H, N_CLASSES)),
        "out_b": zeros((1, N_CLASSES)),
    }


# ----------------------------- forward pass --------------------------------------
def bert_class_forward(params, input_ids, attention_mask):
    B, S = input_ids.shape

    # --- embeddings (data-dependent gather = plain-JAX glue) ---
    word = jnp.take(params["word_emb"], input_ids, axis=0)               # (B, S, H)
    pos = params["pos_emb"][:S][None, :, :]                              # (1, S, H)
    tok = params["type_emb"][0][None, None, :]                           # (1, 1, H)
    emb = (word + pos + tok).reshape(B * S, HIDDEN).astype(jnp.float32)

    # additive attention mask over key positions: (1 - mask) * -10000, shape (B, S)
    add_mask = (1.0 - attention_mask.astype(jnp.float32)) * -10000.0

    kernel = functools.partial(_bert_fused_kernel, batch=B, seq=S)
    vmem = pl.BlockSpec(memory_space=pltpu.MemorySpace.VMEM)

    logits = pl.pallas_call(
        kernel,
        out_shape=jax.ShapeDtypeStruct((B, N_CLASSES), jnp.float32),
        in_specs=[vmem] * 20,
        out_specs=vmem,
        scratch_shapes=[
            pltpu.VMEM((B * S, HIDDEN), jnp.float32),   # attention context assembly
            pltpu.VMEM((B, HIDDEN), jnp.float32),       # gathered CLS rows
        ],
        compiler_params=pltpu.CompilerParams(vmem_limit_bytes=32 * 1024 * 1024),
    )(emb, add_mask,
      params["emb_ln_g"], params["emb_ln_b"],
      params["qkv_w"], params["qkv_b"], params["ao_w"], params["ao_b"],
      params["ln1_g"], params["ln1_b"],
      params["ff1_w"], params["ff1_b"], params["ff2_w"], params["ff2_b"],
      params["ln2_g"], params["ln2_b"],
      params["pool_w"], params["pool_b"], params["out_w"], params["out_b"])
    return logits


# ----------------------------- main -----------------------------------------------
if __name__ == "__main__":
    key = jax.random.PRNGKey(0)
    k_ids, k_params = jax.random.split(key)

    B, S = 2, 8
    input_ids = jax.random.randint(k_ids, (B, S), 0, VOCAB, dtype=jnp.int32)
    attention_mask = jnp.ones((B, S), dtype=jnp.int32)

    params = init_params(k_params)
    logits = jax.jit(bert_class_forward)(params, input_ids, attention_mask)
    jax.block_until_ready(logits)
    assert logits.shape == (B, N_CLASSES)
    print("KERNEL_OK")
</pallas_src>

<mosaic_0001>
module attributes {stable_mosaic.version = 11 : i64} {
  func.func @_bert_fused_kernel(%arg0: memref<16x32xf32, #tpu.memory_space<vmem>>, %arg1: memref<2x8xf32, #tpu.memory_space<vmem>>, %arg2: memref<1x32xf32, #tpu.memory_space<vmem>>, %arg3: memref<1x32xf32, #tpu.memory_space<vmem>>, %arg4: memref<2x32x96xf32, #tpu.memory_space<vmem>>, %arg5: memref<2x1x96xf32, #tpu.memory_space<vmem>>, %arg6: memref<2x32x32xf32, #tpu.memory_space<vmem>>, %arg7: memref<2x1x32xf32, #tpu.memory_space<vmem>>, %arg8: memref<2x1x32xf32, #tpu.memory_space<vmem>>, %arg9: memref<2x1x32xf32, #tpu.memory_space<vmem>>, %arg10: memref<2x32x64xf32, #tpu.memory_space<vmem>>, %arg11: memref<2x1x64xf32, #tpu.memory_space<vmem>>, %arg12: memref<2x64x32xf32, #tpu.memory_space<vmem>>, %arg13: memref<2x1x32xf32, #tpu.memory_space<vmem>>, %arg14: memref<2x1x32xf32, #tpu.memory_space<vmem>>, %arg15: memref<2x1x32xf32, #tpu.memory_space<vmem>>, %arg16: memref<32x32xf32, #tpu.memory_space<vmem>>, %arg17: memref<1x32xf32, #tpu.memory_space<vmem>>, %arg18: memref<32x3xf32, #tpu.memory_space<vmem>>, %arg19: memref<1x3xf32, #tpu.memory_space<vmem>>, %arg20: memref<2x3xf32, #tpu.memory_space<vmem>>, %arg21: memref<16x32xf32, #tpu.memory_space<vmem>>, %arg22: memref<2x32xf32, #tpu.memory_space<vmem>>) attributes {dimension_semantics = [], scalar_prefetch = 0 : i64, scratch_operands = 2 : i64, tpu.core_type = #tpu.core_type<tc>} {
    %c0 = arith.constant 0 : index
    %c0_0 = arith.constant 0 : index
    %0 = vector.load %arg0[%c0, %c0_0] : memref<16x32xf32, #tpu.memory_space<vmem>>, vector<16x32xf32>
    %c0_1 = arith.constant 0 : index
    %c0_2 = arith.constant 0 : index
    %1 = vector.load %arg2[%c0_1, %c0_2] : memref<1x32xf32, #tpu.memory_space<vmem>>, vector<1x32xf32>
    %c0_3 = arith.constant 0 : index
    %c0_4 = arith.constant 0 : index
    %2 = vector.load %arg3[%c0_3, %c0_4] : memref<1x32xf32, #tpu.memory_space<vmem>>, vector<1x32xf32>
    %cst = arith.constant dense<0.000000e+00> : vector<16xf32>
    %3 = vector.multi_reduction <add>, %0, %cst [1] : vector<16x32xf32> to vector<16xf32>
    %4 = vector.shape_cast %3 : vector<16xf32> to vector<16x1xf32>
    %cst_5 = arith.constant 3.200000e+01 : f32
    %5 = vector.broadcast %cst_5 : f32 to vector<16x1xf32>
    %6 = arith.divf %4, %5 : vector<16x1xf32>
    %7 = vector.broadcast %6 : vector<16x1xf32> to vector<16x32xf32>
    %8 = arith.subf %0, %7 : vector<16x32xf32>
    %9 = vector.broadcast %6 : vector<16x1xf32> to vector<16x32xf32>
    %10 = arith.subf %0, %9 : vector<16x32xf32>
    %11 = arith.mulf %8, %10 : vector<16x32xf32>
    %cst_6 = arith.constant dense<0.000000e+00> : vector<16xf32>
    %12 = vector.multi_reduction <add>, %11, %cst_6 [1] : vector<16x32xf32> to vector<16xf32>
    %13 = vector.shape_cast %12 : vector<16xf32> to vector<16x1xf32>
    %cst_7 = arith.constant 3.200000e+01 : f32
    %14 = vector.broadcast %cst_7 : f32 to vector<16x1xf32>
    %15 = arith.divf %13, %14 : vector<16x1xf32>
    %16 = vector.broadcast %6 : vector<16x1xf32> to vector<16x32xf32>
    %17 = arith.subf %0, %16 : vector<16x32xf32>
    %cst_8 = arith.constant 9.99999996E-13 : f32
    %18 = vector.broadcast %cst_8 : f32 to vector<16x1xf32>
    %19 = arith.addf %15, %18 : vector<16x1xf32>
    %20 = math.rsqrt %19 : vector<16x1xf32>
    %21 = vector.broadcast %20 : vector<16x1xf32> to vector<16x32xf32>
    %22 = arith.mulf %17, %21 : vector<16x32xf32>
    %23 = vector.broadcast %1 : vector<1x32xf32> to vector<16x32xf32>
    %24 = arith.mulf %22, %23 : vector<16x32xf32>
    %25 = vector.broadcast %2 : vector<1x32xf32> to vector<16x32xf32>
    %26 = arith.addf %24, %25 : vector<16x32xf32>
    %c0_9 = arith.constant 0 : index
    %c0_10 = arith.constant 0 : index
    %27 = vector.load %arg1[%c0_9, %c0_10] : memref<2x8xf32, #tpu.memory_space<vmem>>, vector<2x8xf32>
    %c0_11 = arith.constant 0 : index
    %c0_12 = arith.constant 0 : index
    %c0_13 = arith.constant 0 : index
    %28 = vector.load %arg4[%c0_11, %c0_12, %c0_13] : memref<2x32x96xf32, #tpu.memory_space<vmem>>, vector<1x32x96xf32>
    %29 = vector.shape_cast %28 : vector<1x32x96xf32> to vector<32x96xf32>
    %cst_14 = arith.constant dense<0.000000e+00> : vector<16x96xf32>
    %30 = tpu.matmul %26, %29, %cst_14 {dimension_numbers = #tpu.dot_dimension_numbers<[1], [0], [0], [1], [0, 0, 1, 1], [], []>} : vector<16x32xf32>, vector<32x96xf32>, vector<16x96xf32> -> vector<16x96xf32>
    %c0_15 = arith.constant 0 : index
    %c0_16 = arith.constant 0 : index
    %c0_17 = arith.constant 0 : index
    %31 = vector.load %arg5[%c0_15, %c0_16, %c0_17] : memref<2x1x96xf32, #tpu.memory_space<vmem>>, vector<1x1x96xf32>
    %32 = vector.shape_cast %31 : vector<1x1x96xf32> to vector<1x96xf32>
    %33 = vector.broadcast %32 : vector<1x96xf32> to vector<16x96xf32>
    %34 = arith.addf %30, %33 : vector<16x96xf32>
    %35 = vector.extract_strided_slice %27 {offsets = [0, 0], sizes = [1, 8], strides = [1, 1]} : vector<2x8xf32> to vector<1x8xf32>
    %36 = vector.extract_strided_slice %34 {offsets = [0, 0], sizes = [8, 16], strides = [1, 1]} : vector<16x96xf32> to vector<8x16xf32>
    %37 = vector.extract_strided_slice %34 {offsets = [0, 32], sizes = [8, 16], strides = [1, 1]} : vector<16x96xf32> to vector<8x16xf32>
    %38 = vector.extract_strided_slice %34 {offsets = [0, 64], sizes = [8, 16], strides = [1, 1]} : vector<16x96xf32> to vector<8x16xf32>
    %cst_18 = arith.constant dense<0.000000e+00> : vector<8x8xf32>
    %39 = tpu.matmul %36, %37, %cst_18 {dimension_numbers = #tpu.dot_dimension_numbers<[1], [1], [0], [0], [0, 0, 1, 0], [], []>} : vector<8x16xf32>, vector<8x16xf32>, vector<8x8xf32> -> vector<8x8xf32>
    %cst_19 = arith.constant 2.500000e-01 : f32
    %40 = vector.broadcast %cst_19 : f32 to vector<8x8xf32>
    %41 = arith.mulf %39, %40 : vector<8x8xf32>
    %42 = vector.broadcast %35 : vector<1x8xf32> to vector<8x8xf32>
    %43 = arith.addf %41, %42 : vector<8x8xf32>
    %cst_20 = arith.constant dense<0xFF800000> : vector<8xf32>
    %44 = vector.multi_reduction <maximumf>, %43, %cst_20 [1] : vector<8x8xf32> to vector<8xf32>
    %45 = vector.shape_cast %44 : vector<8xf32> to vector<8x1xf32>
    %46 = vector.broadcast %45 : vector<8x1xf32> to vector<8x8xf32>
    %47 = arith.subf %43, %46 : vector<8x8xf32>
    %48 = math.exp %47 : vector<8x8xf32>
    %cst_21 = arith.constant dense<0.000000e+00> : vector<8xf32>
    %49 = vector.multi_reduction <add>, %48, %cst_21 [1] : vector<8x8xf32> to vector<8xf32>
    %50 = vector.shape_cast %49 : vector<8xf32> to vector<8x1xf32>
    %51 = tpu.reciprocal %50 {approx = true} : vector<8x1xf32> -> vector<8x1xf32>
    %52 = vector.broadcast %51 : vector<8x1xf32> to vector<8x8xf32>
    %53 = arith.mulf %48, %52 : vector<8x8xf32>
    %cst_22 = arith.constant dense<0.000000e+00> : vector<8x16xf32>
    %54 = tpu.matmul %53, %38, %cst_22 {dimension_numbers = #tpu.dot_dimension_numbers<[1], [0], [0], [1], [0, 0, 1, 1], [], []>} : vector<8x8xf32>, vector<8x16xf32>, vector<8x16xf32> -> vector<8x16xf32>
    %c0_23 = arith.constant 0 : index
    %c0_24 = arith.constant 0 : index
    %55 = vector.load %arg21[%c0_23, %c0_24] : memref<16x32xf32, #tpu.memory_space<vmem>>, vector<8x16xf32>
    tpu.vector_store %arg21[%c0_23, %c0_24], %54 {strides = array<i32>} : memref<16x32xf32, #tpu.memory_space<vmem>>, vector<8x16xf32>,
    %56 = vector.extract_strided_slice %34 {offsets = [0, 16], sizes = [8, 16], strides = [1, 1]} : vector<16x96xf32> to vector<8x16xf32>
    %57 = vector.extract_strided_slice %34 {offsets = [0, 48], sizes = [8, 16], strides = [1, 1]} : vector<16x96xf32> to vector<8x16xf32>
    %58 = vector.extract_strided_slice %34 {offsets = [0, 80], sizes = [8, 16], strides = [1, 1]} : vector<16x96xf32> to vector<8x16xf32>
    %cst_25 = arith.constant dense<0.000000e+00> : vector<8x8xf32>
    %59 = tpu.matmul %56, %57, %cst_25 {dimension_numbers = #tpu.dot_dimension_numbers<[1], [1], [0], [0], [0, 0, 1, 0], [], []>} : vector<8x16xf32>, vector<8x16xf32>, vector<8x8xf32> -> vector<8x8xf32>
    %cst_26 = arith.constant 2.500000e-01 : f32
    %60 = vector.broadcast %cst_26 : f32 to vector<8x8xf32>
    %61 = arith.mulf %59, %60 : vector<8x8xf32>
    %62 = vector.broadcast %35 : vector<1x8xf32> to vector<8x8xf32>
    %63 = arith.addf %61, %62 : vector<8x8xf32>
    %cst_27 = arith.constant dense<0xFF800000> : vector<8xf32>
    %64 = vector.multi_reduction <maximumf>, %63, %cst_27 [1] : vector<8x8xf32> to vector<8xf32>
    %65 = vector.shape_cast %64 : vector<8xf32> to vector<8x1xf32>
    %66 = vector.broadcast %65 : vector<8x1xf32> to vector<8x8xf32>
    %67 = arith.subf %63, %66 : vector<8x8xf32>
    %68 = math.exp %67 : vector<8x8xf32>
    %cst_28 = arith.constant dense<0.000000e+00> : vector<8xf32>
    %69 = vector.multi_reduction <add>, %68, %cst_28 [1] : vector<8x8xf32> to vector<8xf32>
    %70 = vector.shape_cast %69 : vector<8xf32> to vector<8x1xf32>
    %71 = tpu.reciprocal %70 {approx = true} : vector<8x1xf32> -> vector<8x1xf32>
    %72 = vector.broadcast %71 : vector<8x1xf32> to vector<8x8xf32>
    %73 = arith.mulf %68, %72 : vector<8x8xf32>
    %cst_29 = arith.constant dense<0.000000e+00> : vector<8x16xf32>
    %74 = tpu.matmul %73, %58, %cst_29 {dimension_numbers = #tpu.dot_dimension_numbers<[1], [0], [0], [1], [0, 0, 1, 1], [], []>} : vector<8x8xf32>, vector<8x16xf32>, vector<8x16xf32> -> vector<8x16xf32>
    %c0_30 = arith.constant 0 : index
    %c16 = arith.constant 16 : index
    %75 = vector.load %arg21[%c0_30, %c16] : memref<16x32xf32, #tpu.memory_space<vmem>>, vector<8x16xf32>
    tpu.vector_store %arg21[%c0_30, %c16], %74 {strides = array<i32>} : memref<16x32xf32, #tpu.memory_space<vmem>>, vector<8x16xf32>,
    %76 = vector.extract_strided_slice %27 {offsets = [1, 0], sizes = [1, 8], strides = [1, 1]} : vector<2x8xf32> to vector<1x8xf32>
    %77 = vector.extract_strided_slice %34 {offsets = [8, 0], sizes = [8, 16], strides = [1, 1]} : vector<16x96xf32> to vector<8x16xf32>
    %78 = vector.extract_strided_slice %34 {offsets = [8, 32], sizes = [8, 16], strides = [1, 1]} : vector<16x96xf32> to vector<8x16xf32>
    %79 = vector.extract_strided_slice %34 {offsets = [8, 64], sizes = [8, 16], strides = [1, 1]} : vector<16x96xf32> to vector<8x16xf32>
    %cst_31 = arith.constant dense<0.000000e+00> : vector<8x8xf32>
    %80 = tpu.matmul %77, %78, %cst_31 {dimension_numbers = #tpu.dot_dimension_numbers<[1], [1], [0], [0], [0, 0, 1, 0], [], []>} : vector<8x16xf32>, vector<8x16xf32>, vector<8x8xf32> -> vector<8x8xf32>
    %cst_32 = arith.constant 2.500000e-01 : f32
    %81 = vector.broadcast %cst_32 : f32 to vector<8x8xf32>
    %82 = arith.mulf %80, %81 : vector<8x8xf32>
    %83 = vector.broadcast %76 : vector<1x8xf32> to vector<8x8xf32>
    %84 = arith.addf %82, %83 : vector<8x8xf32>
    %cst_33 = arith.constant dense<0xFF800000> : vector<8xf32>
    %85 = vector.multi_reduction <maximumf>, %84, %cst_33 [1] : vector<8x8xf32> to vector<8xf32>
    %86 = vector.shape_cast %85 : vector<8xf32> to vector<8x1xf32>
    %87 = vector.broadcast %86 : vector<8x1xf32> to vector<8x8xf32>
    %88 = arith.subf %84, %87 : vector<8x8xf32>
    %89 = math.exp %88 : vector<8x8xf32>
    %cst_34 = arith.constant dense<0.000000e+00> : vector<8xf32>
    %90 = vector.multi_reduction <add>, %89, %cst_34 [1] : vector<8x8xf32> to vector<8xf32>
    %91 = vector.shape_cast %90 : vector<8xf32> to vector<8x1xf32>
    %92 = tpu.reciprocal %91 {approx = true} : vector<8x1xf32> -> vector<8x1xf32>
    %93 = vector.broadcast %92 : vector<8x1xf32> to vector<8x8xf32>
    %94 = arith.mulf %89, %93 : vector<8x8xf32>
    %cst_35 = arith.constant dense<0.000000e+00> : vector<8x16xf32>
    %95 = tpu.matmul %94, %79, %cst_35 {dimension_numbers = #tpu.dot_dimension_numbers<[1], [0], [0], [1], [0, 0, 1, 1], [], []>} : vector<8x8xf32>, vector<8x16xf32>, vector<8x16xf32> -> vector<8x16xf32>
    %c8 = arith.constant 8 : index
    %c0_36 = arith.constant 0 : index
    %96 = vector.load %arg21[%c8, %c0_36] : memref<16x32xf32, #tpu.memory_space<vmem>>, vector<8x16xf32>
    tpu.vector_store %arg21[%c8, %c0_36], %95 {strides = array<i32>} : memref<16x32xf32, #tpu.memory_space<vmem>>, vector<8x16xf32>,
    %97 = vector.extract_strided_slice %34 {offsets = [8, 16], sizes = [8, 16], strides = [1, 1]} : vector<16x96xf32> to vector<8x16xf32>
    %98 = vector.extract_strided_slice %34 {offsets = [8, 48], sizes = [8, 16], strides = [1, 1]} : vector<16x96xf32> to vector<8x16xf32>
    %99 = vector.extract_strided_slice %34 {offsets = [8, 80], sizes = [8, 16], strides = [1, 1]} : vector<16x96xf32> to vector<8x16xf32>
    %cst_37 = arith.constant dense<0.000000e+00> : vector<8x8xf32>
    %100 = tpu.matmul %97, %98, %cst_37 {dimension_numbers = #tpu.dot_dimension_numbers<[1], [1], [0], [0], [0, 0, 1, 0], [], []>} : vector<8x16xf32>, vector<8x16xf32>, vector<8x8xf32> -> vector<8x8xf32>
    %cst_38 = arith.constant 2.500000e-01 : f32
    %101 = vector.broadcast %cst_38 : f32 to vector<8x8xf32>
    %102 = arith.mulf %100, %101 : vector<8x8xf32>
    %103 = vector.broadcast %76 : vector<1x8xf32> to vector<8x8xf32>
    %104 = arith.addf %102, %103 : vector<8x8xf32>
    %cst_39 = arith.constant dense<0xFF800000> : vector<8xf32>
    %105 = vector.multi_reduction <maximumf>, %104, %cst_39 [1] : vector<8x8xf32> to vector<8xf32>
    %106 = vector.shape_cast %105 : vector<8xf32> to vector<8x1xf32>
    %107 = vector.broadcast %106 : vector<8x1xf32> to vector<8x8xf32>
    %108 = arith.subf %104, %107 : vector<8x8xf32>
    %109 = math.exp %108 : vector<8x8xf32>
    %cst_40 = arith.constant dense<0.000000e+00> : vector<8xf32>
    %110 = vector.multi_reduction <add>, %109, %cst_40 [1] : vector<8x8xf32> to vector<8xf32>
    %111 = vector.shape_cast %110 : vector<8xf32> to vector<8x1xf32>
    %112 = tpu.reciprocal %111 {approx = true} : vector<8x1xf32> -> vector<8x1xf32>
    %113 = vector.broadcast %112 : vector<8x1xf32> to vector<8x8xf32>
    %114 = arith.mulf %109, %113 : vector<8x8xf32>
    %cst_41 = arith.constant dense<0.000000e+00> : vector<8x16xf32>
    %115 = tpu.matmul %114, %99, %cst_41 {dimension_numbers = #tpu.dot_dimension_numbers<[1], [0], [0], [1], [0, 0, 1, 1], [], []>} : vector<8x8xf32>, vector<8x16xf32>, vector<8x16xf32> -> vector<8x16xf32>
    %c8_42 = arith.constant 8 : index
    %c16_43 = arith.constant 16 : index
    %116 = vector.load %arg21[%c8_42, %c16_43] : memref<16x32xf32, #tpu.memory_space<vmem>>, vector<8x16xf32>
    tpu.vector_store %arg21[%c8_42, %c16_43], %115 {strides = array<i32>} : memref<16x32xf32, #tpu.memory_space<vmem>>, vector<8x16xf32>,
    %c0_44 = arith.constant 0 : index
    %c0_45 = arith.constant 0 : index
    %117 = vector.load %arg21[%c0_44, %c0_45] : memref<16x32xf32, #tpu.memory_space<vmem>>, vector<16x32xf32>
    %c0_46 = arith.constant 0 : index
    %c0_47 = arith.constant 0 : index
    %c0_48 = arith.constant 0 : index
    %118 = vector.load %arg6[%c0_46, %c0_47, %c0_48] : memref<2x32x32xf32, #tpu.memory_space<vmem>>, vector<1x32x32xf32>
    %119 = vector.shape_cast %118 : vector<1x32x32xf32> to vector<32x32xf32>
    %cst_49 = arith.constant dense<0.000000e+00> : vector<16x32xf32>
    %120 = tpu.matmul %117, %119, %cst_49 {dimension_numbers = #tpu.dot_dimension_numbers<[1], [0], [0], [1], [0, 0, 1, 1], [], []>} : vector<16x32xf32>, vector<32x32xf32>, vector<16x32xf32> -> vector<16x32xf32>
    %c0_50 = arith.constant 0 : index
    %c0_51 = arith.constant 0 : index
    %c0_52 = arith.constant 0 : index
    %121 = vector.load %arg7[%c0_50, %c0_51, %c0_52] : memref<2x1x32xf32, #tpu.memory_space<vmem>>, vector<1x1x32xf32>
    %122 = vector.shape_cast %121 : vector<1x1x32xf32> to vector<1x32xf32>
    %123 = vector.broadcast %122 : vector<1x32xf32> to vector<16x32xf32>
    %124 = arith.addf %120, %123 : vector<16x32xf32>
    %125 = arith.addf %124, %26 : vector<16x32xf32>
    %c0_53 = arith.constant 0 : index
    %c0_54 = arith.constant 0 : index
    %c0_55 = arith.constant 0 : index
    %126 = vector.load %arg8[%c0_53, %c0_54, %c0_55] : memref<2x1x32xf32, #tpu.memory_space<vmem>>, vector<1x1x32xf32>
    %127 = vector.shape_cast %126 : vector<1x1x32xf32> to vector<1x32xf32>
    %c0_56 = arith.constant 0 : index
    %c0_57 = arith.constant 0 : index
    %c0_58 = arith.constant 0 : index
    %128 = vector.load %arg9[%c0_56, %c0_57, %c0_58] : memref<2x1x32xf32, #tpu.memory_space<vmem>>, vector<1x1x32xf32>
    %129 = vector.shape_cast %128 : vector<1x1x32xf32> to vector<1x32xf32>
    %cst_59 = arith.constant dense<0.000000e+00> : vector<16xf32>
    %130 = vector.multi_reduction <add>, %125, %cst_59 [1] : vector<16x32xf32> to vector<16xf32>
    %131 = vector.shape_cast %130 : vector<16xf32> to vector<16x1xf32>
    %cst_60 = arith.constant 3.200000e+01 : f32
    %132 = vector.broadcast %cst_60 : f32 to vector<16x1xf32>
    %133 = arith.divf %131, %132 : vector<16x1xf32>
    %134 = vector.broadcast %133 : vector<16x1xf32> to vector<16x32xf32>
    %135 = arith.subf %125, %134 : vector<16x32xf32>
    %136 = vector.broadcast %133 : vector<16x1xf32> to vector<16x32xf32>
    %137 = arith.subf %125, %136 : vector<16x32xf32>
    %138 = arith.mulf %135, %137 : vector<16x32xf32>
    %cst_61 = arith.constant dense<0.000000e+00> : vector<16xf32>
    %139 = vector.multi_reduction <add>, %138, %cst_61 [1] : vector<16x32xf32> to vector<16xf32>
    %140 = vector.shape_cast %139 : vector<16xf32> to vector<16x1xf32>
    %cst_62 = arith.constant 3.200000e+01 : f32
    %141 = vector.broadcast %cst_62 : f32 to vector<16x1xf32>
    %142 = arith.divf %140, %141 : vector<16x1xf32>
    %143 = vector.broadcast %133 : vector<16x1xf32> to vector<16x32xf32>
    %144 = arith.subf %125, %143 : vector<16x32xf32>
    %cst_63 = arith.constant 9.99999996E-13 : f32
    %145 = vector.broadcast %cst_63 : f32 to vector<16x1xf32>
    %146 = arith.addf %142, %145 : vector<16x1xf32>
    %147 = math.rsqrt %146 : vector<16x1xf32>
    %148 = vector.broadcast %147 : vector<16x1xf32> to vector<16x32xf32>
    %149 = arith.mulf %144, %148 : vector<16x32xf32>
    %150 = vector.broadcast %127 : vector<1x32xf32> to vector<16x32xf32>
    %151 = arith.mulf %149, %150 : vector<16x32xf32>
    %152 = vector.broadcast %129 : vector<1x32xf32> to vector<16x32xf32>
    %153 = arith.addf %151, %152 : vector<16x32xf32>
    %c0_64 = arith.constant 0 : index
    %c0_65 = arith.constant 0 : index
    %c0_66 = arith.constant 0 : index
    %154 = vector.load %arg10[%c0_64, %c0_65, %c0_66] : memref<2x32x64xf32, #tpu.memory_space<vmem>>, vector<1x32x64xf32>
    %155 = vector.shape_cast %154 : vector<1x32x64xf32> to vector<32x64xf32>
    %cst_67 = arith.constant dense<0.000000e+00> : vector<16x64xf32>
    %156 = tpu.matmul %153, %155, %cst_67 {dimension_numbers = #tpu.dot_dimension_numbers<[1], [0], [0], [1], [0, 0, 1, 1], [], []>} : vector<16x32xf32>, vector<32x64xf32>, vector<16x64xf32> -> vector<16x64xf32>
    %c0_68 = arith.constant 0 : index
    %c0_69 = arith.constant 0 : index
    %c0_70 = arith.constant 0 : index
    %157 = vector.load %arg11[%c0_68, %c0_69, %c0_70] : memref<2x1x64xf32, #tpu.memory_space<vmem>>, vector<1x1x64xf32>
    %158 = vector.shape_cast %157 : vector<1x1x64xf32> to vector<1x64xf32>
    %159 = vector.broadcast %158 : vector<1x64xf32> to vector<16x64xf32>
    %160 = arith.addf %156, %159 : vector<16x64xf32>
    %cst_71 = arith.constant 5.000000e-01 : f32
    %161 = vector.broadcast %cst_71 : f32 to vector<16x64xf32>
    %162 = arith.mulf %161, %160 : vector<16x64xf32>
    %cst_72 = arith.constant 0.707106769 : f32
    %163 = vector.broadcast %cst_72 : f32 to vector<16x64xf32>
    %164 = arith.mulf %160, %163 : vector<16x64xf32>
    %165 = math.absf %164 : vector<16x64xf32>
    %cst_73 = arith.constant 0.327591091 : f32
    %166 = vector.broadcast %cst_73 : f32 to vector<16x64xf32>
    %167 = arith.mulf %166, %165 : vector<16x64xf32>
    %cst_74 = arith.constant 1.000000e+00 : f32
    %168 = vector.broadcast %cst_74 : f32 to vector<16x64xf32>
    %169 = arith.addf %168, %167 : vector<16x64xf32>
    %cst_75 = arith.constant 1.000000e+00 : f32
    %170 = vector.broadcast %cst_75 : f32 to vector<16x64xf32>
    %171 = arith.divf %170, %169 : vector<16x64xf32>
    %cst_76 = arith.constant 1.06140542 : f32
    %172 = vector.broadcast %cst_76 : f32 to vector<16x64xf32>
    %173 = arith.mulf %172, %171 : vector<16x64xf32>
    %cst_77 = arith.constant -1.45315206 : f32
    %174 = vector.broadcast %cst_77 : f32 to vector<16x64xf32>
    %175 = arith.addf %173, %174 : vector<16x64xf32>
    %176 = arith.mulf %175, %171 : vector<16x64xf32>
    %cst_78 = arith.constant 1.42141378 : f32
    %177 = vector.broadcast %cst_78 : f32 to vector<16x64xf32>
    %178 = arith.addf %176, %177 : vector<16x64xf32>
    %179 = arith.mulf %178, %171 : vector<16x64xf32>
    %cst_79 = arith.constant -0.284496725 : f32
    %180 = vector.broadcast %cst_79 : f32 to vector<16x64xf32>
    %181 = arith.addf %179, %180 : vector<16x64xf32>
    %182 = arith.mulf %181, %171 : vector<16x64xf32>
    %cst_80 = arith.constant 0.254829586 : f32
    %183 = vector.broadcast %cst_80 : f32 to vector<16x64xf32>
    %184 = arith.addf %182, %183 : vector<16x64xf32>
    %185 = arith.mulf %184, %171 : vector<16x64xf32>
    %cst_81 = arith.constant 0.000000e+00 : f32
    %186 = vector.broadcast %cst_81 : f32 to vector<16x64xf32>
    %187 = arith.subf %186, %165 : vector<16x64xf32>
    %188 = arith.mulf %187, %165 : vector<16x64xf32>
    %189 = math.exp %188 : vector<16x64xf32>
    %190 = arith.mulf %185, %189 : vector<16x64xf32>
    %cst_82 = arith.constant 1.000000e+00 : f32
    %191 = vector.broadcast %cst_82 : f32 to vector<16x64xf32>
    %192 = arith.subf %191, %190 : vector<16x64xf32>
    %cst_83 = arith.constant 0.000000e+00 : f32
    %193 = vector.broadcast %cst_83 : f32 to vector<16x64xf32>
    %194 = arith.cmpf oge, %164, %193 : vector<16x64xf32>
    %cst_84 = arith.constant 0.000000e+00 : f32
    %195 = vector.broadcast %cst_84 : f32 to vector<16x64xf32>
    %196 = arith.subf %195, %192 : vector<16x64xf32>
    %197 = arith.select %194, %192, %196 : vector<16x64xi1>, vector<16x64xf32>
    %cst_85 = arith.constant 1.000000e+00 : f32
    %198 = vector.broadcast %cst_85 : f32 to vector<16x64xf32>
    %199 = arith.addf %198, %197 : vector<16x64xf32>
    %200 = arith.mulf %162, %199 : vector<16x64xf32>
    %c0_86 = arith.constant 0 : index
    %c0_87 = arith.constant 0 : index
    %c0_88 = arith.constant 0 : index
    %201 = vector.load %arg12[%c0_86, %c0_87, %c0_88] : memref<2x64x32xf32, #tpu.memory_space<vmem>>, vector<1x64x32xf32>
    %202 = vector.shape_cast %201 : vector<1x64x32xf32> to vector<64x32xf32>
    %cst_89 = arith.constant dense<0.000000e+00> : vector<16x32xf32>
    %203 = tpu.matmul %200, %202, %cst_89 {dimension_numbers = #tpu.dot_dimension_numbers<[1], [0], [0], [1], [0, 0, 1, 1], [], []>} : vector<16x64xf32>, vector<64x32xf32>, vector<16x32xf32> -> vector<16x32xf32>
    %c0_90 = arith.constant 0 : index
    %c0_91 = arith.constant 0 : index
    %c0_92 = arith.constant 0 : index
    %204 = vector.load %arg13[%c0_90, %c0_91, %c0_92] : memref<2x1x32xf32, #tpu.memory_space<vmem>>, vector<1x1x32xf32>
    %205 = vector.shape_cast %204 : vector<1x1x32xf32> to vector<1x32xf32>
    %206 = vector.broadcast %205 : vector<1x32xf32> to vector<16x32xf32>
    %207 = arith.addf %203, %206 : vector<16x32xf32>
    %208 = arith.addf %207, %153 : vector<16x32xf32>
    %c0_93 = arith.constant 0 : index
    %c0_94 = arith.constant 0 : index
    %c0_95 = arith.constant 0 : index
    %209 = vector.load %arg14[%c0_93, %c0_94, %c0_95] : memref<2x1x32xf32, #tpu.memory_space<vmem>>, vector<1x1x32xf32>
    %210 = vector.shape_cast %209 : vector<1x1x32xf32> to vector<1x32xf32>
    %c0_96 = arith.constant 0 : index
    %c0_97 = arith.constant 0 : index
    %c0_98 = arith.constant 0 : index
    %211 = vector.load %arg15[%c0_96, %c0_97, %c0_98] : memref<2x1x32xf32, #tpu.memory_space<vmem>>, vector<1x1x32xf32>
    %212 = vector.shape_cast %211 : vector<1x1x32xf32> to vector<1x32xf32>
    %cst_99 = arith.constant dense<0.000000e+00> : vector<16xf32>
    %213 = vector.multi_reduction <add>, %208, %cst_99 [1] : vector<16x32xf32> to vector<16xf32>
    %214 = vector.shape_cast %213 : vector<16xf32> to vector<16x1xf32>
    %cst_100 = arith.constant 3.200000e+01 : f32
    %215 = vector.broadcast %cst_100 : f32 to vector<16x1xf32>
    %216 = arith.divf %214, %215 : vector<16x1xf32>
    %217 = vector.broadcast %216 : vector<16x1xf32> to vector<16x32xf32>
    %218 = arith.subf %208, %217 : vector<16x32xf32>
    %219 = vector.broadcast %216 : vector<16x1xf32> to vector<16x32xf32>
    %220 = arith.subf %208, %219 : vector<16x32xf32>
    %221 = arith.mulf %218, %220 : vector<16x32xf32>
    %cst_101 = arith.constant dense<0.000000e+00> : vector<16xf32>
    %222 = vector.multi_reduction <add>, %221, %cst_101 [1] : vector<16x32xf32> to vector<16xf32>
    %223 = vector.shape_cast %222 : vector<16xf32> to vector<16x1xf32>
    %cst_102 = arith.constant 3.200000e+01 : f32
    %224 = vector.broadcast %cst_102 : f32 to vector<16x1xf32>
    %225 = arith.divf %223, %224 : vector<16x1xf32>
    %226 = vector.broadcast %216 : vector<16x1xf32> to vector<16x32xf32>
    %227 = arith.subf %208, %226 : vector<16x32xf32>
    %cst_103 = arith.constant 9.99999996E-13 : f32
    %228 = vector.broadcast %cst_103 : f32 to vector<16x1xf32>
    %229 = arith.addf %225, %228 : vector<16x1xf32>
    %230 = math.rsqrt %229 : vector<16x1xf32>
    %231 = vector.broadcast %230 : vector<16x1xf32> to vector<16x32xf32>
    %232 = arith.mulf %227, %231 : vector<16x32xf32>
    %233 = vector.broadcast %210 : vector<1x32xf32> to vector<16x32xf32>
    %234 = arith.mulf %232, %233 : vector<16x32xf32>
    %235 = vector.broadcast %212 : vector<1x32xf32> to vector<16x32xf32>
    %236 = arith.addf %234, %235 : vector<16x32xf32>
    %c1 = arith.constant 1 : index
    %c0_104 = arith.constant 0 : index
    %c0_105 = arith.constant 0 : index
    %237 = vector.load %arg4[%c1, %c0_104, %c0_105] : memref<2x32x96xf32, #tpu.memory_space<vmem>>, vector<1x32x96xf32>
    %238 = vector.shape_cast %237 : vector<1x32x96xf32> to vector<32x96xf32>
    %cst_106 = arith.constant dense<0.000000e+00> : vector<16x96xf32>
    %239 = tpu.matmul %236, %238, %cst_106 {dimension_numbers = #tpu.dot_dimension_numbers<[1], [0], [0], [1], [0, 0, 1, 1], [], []>} : vector<16x32xf32>, vector<32x96xf32>, vector<16x96xf32> -> vector<16x96xf32>
    %c1_107 = arith.constant 1 : index
    %c0_108 = arith.constant 0 : index
    %c0_109 = arith.constant 0 : index
    %240 = vector.load %arg5[%c1_107, %c0_108, %c0_109] : memref<2x1x96xf32, #tpu.memory_space<vmem>>, vector<1x1x96xf32>
    %241 = vector.shape_cast %240 : vector<1x1x96xf32> to vector<1x96xf32>
    %242 = vector.broadcast %241 : vector<1x96xf32> to vector<16x96xf32>
    %243 = arith.addf %239, %242 : vector<16x96xf32>
    %244 = vector.extract_strided_slice %27 {offsets = [0, 0], sizes = [1, 8], strides = [1, 1]} : vector<2x8xf32> to vector<1x8xf32>
    %245 = vector.extract_strided_slice %243 {offsets = [0, 0], sizes = [8, 16], strides = [1, 1]} : vector<16x96xf32> to vector<8x16xf32>
    %246 = vector.extract_strided_slice %243 {offsets = [0, 32], sizes = [8, 16], strides = [1, 1]} : vector<16x96xf32> to vector<8x16xf32>
    %247 = vector.extract_strided_slice %243 {offsets = [0, 64], sizes = [8, 16], strides = [1, 1]} : vector<16x96xf32> to vector<8x16xf32>
    %cst_110 = arith.constant dense<0.000000e+00> : vector<8x8xf32>
    %248 = tpu.matmul %245, %246, %cst_110 {dimension_numbers = #tpu.dot_dimension_numbers<[1], [1], [0], [0], [0, 0, 1, 0], [], []>} : vector<8x16xf32>, vector<8x16xf32>, vector<8x8xf32> -> vector<8x8xf32>
    %cst_111 = arith.constant 2.500000e-01 : f32
    %249 = vector.broadcast %cst_111 : f32 to vector<8x8xf32>
    %250 = arith.mulf %248, %249 : vector<8x8xf32>
    %251 = vector.broadcast %244 : vector<1x8xf32> to vector<8x8xf32>
    %252 = arith.addf %250, %251 : vector<8x8xf32>
    %cst_112 = arith.constant dense<0xFF800000> : vector<8xf32>
    %253 = vector.multi_reduction <maximumf>, %252, %cst_112 [1] : vector<8x8xf32> to vector<8xf32>
    %254 = vector.shape_cast %253 : vector<8xf32> to vector<8x1xf32>
    %255 = vector.broadcast %254 : vector<8x1xf32> to vector<8x8xf32>
    %256 = arith.subf %252, %255 : vector<8x8xf32>
    %257 = math.exp %256 : vector<8x8xf32>
    %cst_113 = arith.constant dense<0.000000e+00> : vector<8xf32>
    %258 = vector.multi_reduction <add>, %257, %cst_113 [1] : vector<8x8xf32> to vector<8xf32>
    %259 = vector.shape_cast %258 : vector<8xf32> to vector<8x1xf32>
    %260 = tpu.reciprocal %259 {approx = true} : vector<8x1xf32> -> vector<8x1xf32>
    %261 = vector.broadcast %260 : vector<8x1xf32> to vector<8x8xf32>
    %262 = arith.mulf %257, %261 : vector<8x8xf32>
    %cst_114 = arith.constant dense<0.000000e+00> : vector<8x16xf32>
    %263 = tpu.matmul %262, %247, %cst_114 {dimension_numbers = #tpu.dot_dimension_numbers<[1], [0], [0], [1], [0, 0, 1, 1], [], []>} : vector<8x8xf32>, vector<8x16xf32>, vector<8x16xf32> -> vector<8x16xf32>
    %c0_115 = arith.constant 0 : index
    %c0_116 = arith.constant 0 : index
    %264 = vector.load %arg21[%c0_115, %c0_116] : memref<16x32xf32, #tpu.memory_space<vmem>>, vector<8x16xf32>
    tpu.vector_store %arg21[%c0_115, %c0_116], %263 {strides = array<i32>} : memref<16x32xf32, #tpu.memory_space<vmem>>, vector<8x16xf32>,
    %265 = vector.extract_strided_slice %243 {offsets = [0, 16], sizes = [8, 16], strides = [1, 1]} : vector<16x96xf32> to vector<8x16xf32>
    %266 = vector.extract_strided_slice %243 {offsets = [0, 48], sizes = [8, 16], strides = [1, 1]} : vector<16x96xf32> to vector<8x16xf32>
    %267 = vector.extract_strided_slice %243 {offsets = [0, 80], sizes = [8, 16], strides = [1, 1]} : vector<16x96xf32> to vector<8x16xf32>
    %cst_117 = arith.constant dense<0.000000e+00> : vector<8x8xf32>
    %268 = tpu.matmul %265, %266, %cst_117 {dimension_numbers = #tpu.dot_dimension_numbers<[1], [1], [0], [0], [0, 0, 1, 0], [], []>} : vector<8x16xf32>, vector<8x16xf32>, vector<8x8xf32> -> vector<8x8xf32>
    %cst_118 = arith.constant 2.500000e-01 : f32
    %269 = vector.broadcast %cst_118 : f32 to vector<8x8xf32>
    %270 = arith.mulf %268, %269 : vector<8x8xf32>
    %271 = vector.broadcast %244 : vector<1x8xf32> to vector<8x8xf32>
    %272 = arith.addf %270, %271 : vector<8x8xf32>
    %cst_119 = arith.constant dense<0xFF800000> : vector<8xf32>
    %273 = vector.multi_reduction <maximumf>, %272, %cst_119 [1] : vector<8x8xf32> to vector<8xf32>
    %274 = vector.shape_cast %273 : vector<8xf32> to vector<8x1xf32>
    %275 = vector.broadcast %274 : vector<8x1xf32> to vector<8x8xf32>
    %276 = arith.subf %272, %275 : vector<8x8xf32>
    %277 = math.exp %276 : vector<8x8xf32>
    %cst_120 = arith.constant dense<0.000000e+00> : vector<8xf32>
    %278 = vector.multi_reduction <add>, %277, %cst_120 [1] : vector<8x8xf32> to vector<8xf32>
    %279 = vector.shape_cast %278 : vector<8xf32> to vector<8x1xf32>
    %280 = tpu.reciprocal %279 {approx = true} : vector<8x1xf32> -> vector<8x1xf32>
    %281 = vector.broadcast %280 : vector<8x1xf32> to vector<8x8xf32>
    %282 = arith.mulf %277, %281 : vector<8x8xf32>
    %cst_121 = arith.constant dense<0.000000e+00> : vector<8x16xf32>
    %283 = tpu.matmul %282, %267, %cst_121 {dimension_numbers = #tpu.dot_dimension_numbers<[1], [0], [0], [1], [0, 0, 1, 1], [], []>} : vector<8x8xf32>, vector<8x16xf32>, vector<8x16xf32> -> vector<8x16xf32>
    %c0_122 = arith.constant 0 : index
    %c16_123 = arith.constant 16 : index
    %284 = vector.load %arg21[%c0_122, %c16_123] : memref<16x32xf32, #tpu.memory_space<vmem>>, vector<8x16xf32>
    tpu.vector_store %arg21[%c0_122, %c16_123], %283 {strides = array<i32>} : memref<16x32xf32, #tpu.memory_space<vmem>>, vector<8x16xf32>,
    %285 = vector.extract_strided_slice %27 {offsets = [1, 0], sizes = [1, 8], strides = [1, 1]} : vector<2x8xf32> to vector<1x8xf32>
    %286 = vector.extract_strided_slice %243 {offsets = [8, 0], sizes = [8, 16], strides = [1, 1]} : vector<16x96xf32> to vector<8x16xf32>
    %287 = vector.extract_strided_slice %243 {offsets = [8, 32], sizes = [8, 16], strides = [1, 1]} : vector<16x96xf32> to vector<8x16xf32>
    %288 = vector.extract_strided_slice %243 {offsets = [8, 64], sizes = [8, 16], strides = [1, 1]} : vector<16x96xf32> to vector<8x16xf32>
    %cst_124 = arith.constant dense<0.000000e+00> : vector<8x8xf32>
    %289 = tpu.matmul %286, %287, %cst_124 {dimension_numbers = #tpu.dot_dimension_numbers<[1], [1], [0], [0], [0, 0, 1, 0], [], []>} : vector<8x16xf32>, vector<8x16xf32>, vector<8x8xf32> -> vector<8x8xf32>
    %cst_125 = arith.constant 2.500000e-01 : f32
    %290 = vector.broadcast %cst_125 : f32 to vector<8x8xf32>
    %291 = arith.mulf %289, %290 : vector<8x8xf32>
    %292 = vector.broadcast %285 : vector<1x8xf32> to vector<8x8xf32>
    %293 = arith.addf %291, %292 : vector<8x8xf32>
    %cst_126 = arith.constant dense<0xFF800000> : vector<8xf32>
    %294 = vector.multi_reduction <maximumf>, %293, %cst_126 [1] : vector<8x8xf32> to vector<8xf32>
    %295 = vector.shape_cast %294 : vector<8xf32> to vector<8x1xf32>
    %296 = vector.broadcast %295 : vector<8x1xf32> to vector<8x8xf32>
    %297 = arith.subf %293, %296 : vector<8x8xf32>
    %298 = math.exp %297 : vector<8x8xf32>
    %cst_127 = arith.constant dense<0.000000e+00> : vector<8xf32>
    %299 = vector.multi_reduction <add>, %298, %cst_127 [1] : vector<8x8xf32> to vector<8xf32>
    %300 = vector.shape_cast %299 : vector<8xf32> to vector<8x1xf32>
    %301 = tpu.reciprocal %300 {approx = true} : vector<8x1xf32> -> vector<8x1xf32>
    %302 = vector.broadcast %301 : vector<8x1xf32> to vector<8x8xf32>
    %303 = arith.mulf %298, %302 : vector<8x8xf32>
    %cst_128 = arith.constant dense<0.000000e+00> : vector<8x16xf32>
    %304 = tpu.matmul %303, %288, %cst_128 {dimension_numbers = #tpu.dot_dimension_numbers<[1], [0], [0], [1], [0, 0, 1, 1], [], []>} : vector<8x8xf32>, vector<8x16xf32>, vector<8x16xf32> -> vector<8x16xf32>
    %c8_129 = arith.constant 8 : index
    %c0_130 = arith.constant 0 : index
    %305 = vector.load %arg21[%c8_129, %c0_130] : memref<16x32xf32, #tpu.memory_space<vmem>>, vector<8x16xf32>
    tpu.vector_store %arg21[%c8_129, %c0_130], %304 {strides = array<i32>} : memref<16x32xf32, #tpu.memory_space<vmem>>, vector<8x16xf32>,
    %306 = vector.extract_strided_slice %243 {offsets = [8, 16], sizes = [8, 16], strides = [1, 1]} : vector<16x96xf32> to vector<8x16xf32>
    %307 = vector.extract_strided_slice %243 {offsets = [8, 48], sizes = [8, 16], strides = [1, 1]} : vector<16x96xf32> to vector<8x16xf32>
    %308 = vector.extract_strided_slice %243 {offsets = [8, 80], sizes = [8, 16], strides = [1, 1]} : vector<16x96xf32> to vector<8x16xf32>
    %cst_131 = arith.constant dense<0.000000e+00> : vector<8x8xf32>
    %309 = tpu.matmul %306, %307, %cst_131 {dimension_numbers = #tpu.dot_dimension_numbers<[1], [1], [0], [0], [0, 0, 1, 0], [], []>} : vector<8x16xf32>, vector<8x16xf32>, vector<8x8xf32> -> vector<8x8xf32>
    %cst_132 = arith.constant 2.500000e-01 : f32
    %310 = vector.broadcast %cst_132 : f32 to vector<8x8xf32>
    %311 = arith.mulf %309, %310 : vector<8x8xf32>
    %312 = vector.broadcast %285 : vector<1x8xf32> to vector<8x8xf32>
    %313 = arith.addf %311, %312 : vector<8x8xf32>
    %cst_133 = arith.constant dense<0xFF800000> : vector<8xf32>
    %314 = vector.multi_reduction <maximumf>, %313, %cst_133 [1] : vector<8x8xf32> to vector<8xf32>
    %315 = vector.shape_cast %314 : vector<8xf32> to vector<8x1xf32>
    %316 = vector.broadcast %315 : vector<8x1xf32> to vector<8x8xf32>
    %317 = arith.subf %313, %316 : vector<8x8xf32>
    %318 = math.exp %317 : vector<8x8xf32>
    %cst_134 = arith.constant dense<0.000000e+00> : vector<8xf32>
    %319 = vector.multi_reduction <add>, %318, %cst_134 [1] : vector<8x8xf32> to vector<8xf32>
    %320 = vector.shape_cast %319 : vector<8xf32> to vector<8x1xf32>
    %321 = tpu.reciprocal %320 {approx = true} : vector<8x1xf32> -> vector<8x1xf32>
    %322 = vector.broadcast %321 : vector<8x1xf32> to vector<8x8xf32>
    %323 = arith.mulf %318, %322 : vector<8x8xf32>
    %cst_135 = arith.constant dense<0.000000e+00> : vector<8x16xf32>
    %324 = tpu.matmul %323, %308, %cst_135 {dimension_numbers = #tpu.dot_dimension_numbers<[1], [0], [0], [1], [0, 0, 1, 1], [], []>} : vector<8x8xf32>, vector<8x16xf32>, vector<8x16xf32> -> vector<8x16xf32>
    %c8_136 = arith.constant 8 : index
    %c16_137 = arith.constant 16 : index
    %325 = vector.load %arg21[%c8_136, %c16_137] : memref<16x32xf32, #tpu.memory_space<vmem>>, vector<8x16xf32>
    tpu.vector_store %arg21[%c8_136, %c16_137], %324 {strides = array<i32>} : memref<16x32xf32, #tpu.memory_space<vmem>>, vector<8x16xf32>,
    %c0_138 = arith.constant 0 : index
    %c0_139 = arith.constant 0 : index
    %326 = vector.load %arg21[%c0_138, %c0_139] : memref<16x32xf32, #tpu.memory_space<vmem>>, vector<16x32xf32>
    %c1_140 = arith.constant 1 : index
    %c0_141 = arith.constant 0 : index
    %c0_142 = arith.constant 0 : index
    %327 = vector.load %arg6[%c1_140, %c0_141, %c0_142] : memref<2x32x32xf32, #tpu.memory_space<vmem>>, vector<1x32x32xf32>
    %328 = vector.shape_cast %327 : vector<1x32x32xf32> to vector<32x32xf32>
    %cst_143 = arith.constant dense<0.000000e+00> : vector<16x32xf32>
    %329 = tpu.matmul %326, %328, %cst_143 {dimension_numbers = #tpu.dot_dimension_numbers<[1], [0], [0], [1], [0, 0, 1, 1], [], []>} : vector<16x32xf32>, vector<32x32xf32>, vector<16x32xf32> -> vector<16x32xf32>
    %c1_144 = arith.constant 1 : index
    %c0_145 = arith.constant 0 : index
    %c0_146 = arith.constant 0 : index
    %330 = vector.load %arg7[%c1_144, %c0_145, %c0_146] : memref<2x1x32xf32, #tpu.memory_space<vmem>>, vector<1x1x32xf32>
    %331 = vector.shape_cast %330 : vector<1x1x32xf32> to vector<1x32xf32>
    %332 = vector.broadcast %331 : vector<1x32xf32> to vector<16x32xf32>
    %333 = arith.addf %329, %332 : vector<16x32xf32>
    %334 = arith.addf %333, %236 : vector<16x32xf32>
    %c1_147 = arith.constant 1 : index
    %c0_148 = arith.constant 0 : index
    %c0_149 = arith.constant 0 : index
    %335 = vector.load %arg8[%c1_147, %c0_148, %c0_149] : memref<2x1x32xf32, #tpu.memory_space<vmem>>, vector<1x1x32xf32>
    %336 = vector.shape_cast %335 : vector<1x1x32xf32> to vector<1x32xf32>
    %c1_150 = arith.constant 1 : index
    %c0_151 = arith.constant 0 : index
    %c0_152 = arith.constant 0 : index
    %337 = vector.load %arg9[%c1_150, %c0_151, %c0_152] : memref<2x1x32xf32, #tpu.memory_space<vmem>>, vector<1x1x32xf32>
    %338 = vector.shape_cast %337 : vector<1x1x32xf32> to vector<1x32xf32>
    %cst_153 = arith.constant dense<0.000000e+00> : vector<16xf32>
    %339 = vector.multi_reduction <add>, %334, %cst_153 [1] : vector<16x32xf32> to vector<16xf32>
    %340 = vector.shape_cast %339 : vector<16xf32> to vector<16x1xf32>
    %cst_154 = arith.constant 3.200000e+01 : f32
    %341 = vector.broadcast %cst_154 : f32 to vector<16x1xf32>
    %342 = arith.divf %340, %341 : vector<16x1xf32>
    %343 = vector.broadcast %342 : vector<16x1xf32> to vector<16x32xf32>
    %344 = arith.subf %334, %343 : vector<16x32xf32>
    %345 = vector.broadcast %342 : vector<16x1xf32> to vector<16x32xf32>
    %346 = arith.subf %334, %345 : vector<16x32xf32>
    %347 = arith.mulf %344, %346 : vector<16x32xf32>
    %cst_155 = arith.constant dense<0.000000e+00> : vector<16xf32>
    %348 = vector.multi_reduction <add>, %347, %cst_155 [1] : vector<16x32xf32> to vector<16xf32>
    %349 = vector.shape_cast %348 : vector<16xf32> to vector<16x1xf32>
    %cst_156 = arith.constant 3.200000e+01 : f32
    %350 = vector.broadcast %cst_156 : f32 to vector<16x1xf32>
    %351 = arith.divf %349, %350 : vector<16x1xf32>
    %352 = vector.broadcast %342 : vector<16x1xf32> to vector<16x32xf32>
    %353 = arith.subf %334, %352 : vector<16x32xf32>
    %cst_157 = arith.constant 9.99999996E-13 : f32
    %354 = vector.broadcast %cst_157 : f32 to vector<16x1xf32>
    %355 = arith.addf %351, %354 : vector<16x1xf32>
    %356 = math.rsqrt %355 : vector<16x1xf32>
    %357 = vector.broadcast %356 : vector<16x1xf32> to vector<16x32xf32>
    %358 = arith.mulf %353, %357 : vector<16x32xf32>
    %359 = vector.broadcast %336 : vector<1x32xf32> to vector<16x32xf32>
    %360 = arith.mulf %358, %359 : vector<16x32xf32>
    %361 = vector.broadcast %338 : vector<1x32xf32> to vector<16x32xf32>
    %362 = arith.addf %360, %361 : vector<16x32xf32>
    %c1_158 = arith.constant 1 : index
    %c0_159 = arith.constant 0 : index
    %c0_160 = arith.constant 0 : index
    %363 = vector.load %arg10[%c1_158, %c0_159, %c0_160] : memref<2x32x64xf32, #tpu.memory_space<vmem>>, vector<1x32x64xf32>
    %364 = vector.shape_cast %363 : vector<1x32x64xf32> to vector<32x64xf32>
    %cst_161 = arith.constant dense<0.000000e+00> : vector<16x64xf32>
    %365 = tpu.matmul %362, %364, %cst_161 {dimension_numbers = #tpu.dot_dimension_numbers<[1], [0], [0], [1], [0, 0, 1, 1], [], []>} : vector<16x32xf32>, vector<32x64xf32>, vector<16x64xf32> -> vector<16x64xf32>
    %c1_162 = arith.constant 1 : index
    %c0_163 = arith.constant 0 : index
    %c0_164 = arith.constant 0 : index
    %366 = vector.load %arg11[%c1_162, %c0_163, %c0_164] : memref<2x1x64xf32, #tpu.memory_space<vmem>>, vector<1x1x64xf32>
    %367 = vector.shape_cast %366 : vector<1x1x64xf32> to vector<1x64xf32>
    %368 = vector.broadcast %367 : vector<1x64xf32> to vector<16x64xf32>
    %369 = arith.addf %365, %368 : vector<16x64xf32>
    %cst_165 = arith.constant 5.000000e-01 : f32
    %370 = vector.broadcast %cst_165 : f32 to vector<16x64xf32>
    %371 = arith.mulf %370, %369 : vector<16x64xf32>
    %cst_166 = arith.constant 0.707106769 : f32
    %372 = vector.broadcast %cst_166 : f32 to vector<16x64xf32>
    %373 = arith.mulf %369, %372 : vector<16x64xf32>
    %374 = math.absf %373 : vector<16x64xf32>
    %cst_167 = arith.constant 0.327591091 : f32
    %375 = vector.broadcast %cst_167 : f32 to vector<16x64xf32>
    %376 = arith.mulf %375, %374 : vector<16x64xf32>
    %cst_168 = arith.constant 1.000000e+00 : f32
    %377 = vector.broadcast %cst_168 : f32 to vector<16x64xf32>
    %378 = arith.addf %377, %376 : vector<16x64xf32>
    %cst_169 = arith.constant 1.000000e+00 : f32
    %379 = vector.broadcast %cst_169 : f32 to vector<16x64xf32>
    %380 = arith.divf %379, %378 : vector<16x64xf32>
    %cst_170 = arith.constant 1.06140542 : f32
    %381 = vector.broadcast %cst_170 : f32 to vector<16x64xf32>
    %382 = arith.mulf %381, %380 : vector<16x64xf32>
    %cst_171 = arith.constant -1.45315206 : f32
    %383 = vector.broadcast %cst_171 : f32 to vector<16x64xf32>
    %384 = arith.addf %382, %383 : vector<16x64xf32>
    %385 = arith.mulf %384, %380 : vector<16x64xf32>
    %cst_172 = arith.constant 1.42141378 : f32
    %386 = vector.broadcast %cst_172 : f32 to vector<16x64xf32>
    %387 = arith.addf %385, %386 : vector<16x64xf32>
    %388 = arith.mulf %387, %380 : vector<16x64xf32>
    %cst_173 = arith.constant -0.284496725 : f32
    %389 = vector.broadcast %cst_173 : f32 to vector<16x64xf32>
    %390 = arith.addf %388, %389 : vector<16x64xf32>
    %391 = arith.mulf %390, %380 : vector<16x64xf32>
    %cst_174 = arith.constant 0.254829586 : f32
    %392 = vector.broadcast %cst_174 : f32 to vector<16x64xf32>
    %393 = arith.addf %391, %392 : vector<16x64xf32>
    %394 = arith.mulf %393, %380 : vector<16x64xf32>
    %cst_175 = arith.constant 0.000000e+00 : f32
    %395 = vector.broadcast %cst_175 : f32 to vector<16x64xf32>
    %396 = arith.subf %395, %374 : vector<16x64xf32>
    %397 = arith.mulf %396, %374 : vector<16x64xf32>
    %398 = math.exp %397 : vector<16x64xf32>
    %399 = arith.mulf %394, %398 : vector<16x64xf32>
    %cst_176 = arith.constant 1.000000e+00 : f32
    %400 = vector.broadcast %cst_176 : f32 to vector<16x64xf32>
    %401 = arith.subf %400, %399 : vector<16x64xf32>
    %cst_177 = arith.constant 0.000000e+00 : f32
    %402 = vector.broadcast %cst_177 : f32 to vector<16x64xf32>
    %403 = arith.cmpf oge, %373, %402 : vector<16x64xf32>
    %cst_178 = arith.constant 0.000000e+00 : f32
    %404 = vector.broadcast %cst_178 : f32 to vector<16x64xf32>
    %405 = arith.subf %404, %401 : vector<16x64xf32>
    %406 = arith.select %403, %401, %405 : vector<16x64xi1>, vector<16x64xf32>
    %cst_179 = arith.constant 1.000000e+00 : f32
    %407 = vector.broadcast %cst_179 : f32 to vector<16x64xf32>
    %408 = arith.addf %407, %406 : vector<16x64xf32>
    %409 = arith.mulf %371, %408 : vector<16x64xf32>
    %c1_180 = arith.constant 1 : index
    %c0_181 = arith.constant 0 : index
    %c0_182 = arith.constant 0 : index
    %410 = vector.load %arg12[%c1_180, %c0_181, %c0_182] : memref<2x64x32xf32, #tpu.memory_space<vmem>>, vector<1x64x32xf32>
    %411 = vector.shape_cast %410 : vector<1x64x32xf32> to vector<64x32xf32>
    %cst_183 = arith.constant dense<0.000000e+00> : vector<16x32xf32>
    %412 = tpu.matmul %409, %411, %cst_183 {dimension_numbers = #tpu.dot_dimension_numbers<[1], [0], [0], [1], [0, 0, 1, 1], [], []>} : vector<16x64xf32>, vector<64x32xf32>, vector<16x32xf32> -> vector<16x32xf32>
    %c1_184 = arith.constant 1 : index
    %c0_185 = arith.constant 0 : index
    %c0_186 = arith.constant 0 : index
    %413 = vector.load %arg13[%c1_184, %c0_185, %c0_186] : memref<2x1x32xf32, #tpu.memory_space<vmem>>, vector<1x1x32xf32>
    %414 = vector.shape_cast %413 : vector<1x1x32xf32> to vector<1x32xf32>
    %415 = vector.broadcast %414 : vector<1x32xf32> to vector<16x32xf32>
    %416 = arith.addf %412, %415 : vector<16x32xf32>
    %417 = arith.addf %416, %362 : vector<16x32xf32>
    %c1_187 = arith.constant 1 : index
    %c0_188 = arith.constant 0 : index
    %c0_189 = arith.constant 0 : index
    %418 = vector.load %arg14[%c1_187, %c0_188, %c0_189] : memref<2x1x32xf32, #tpu.memory_space<vmem>>, vector<1x1x32xf32>
    %419 = vector.shape_cast %418 : vector<1x1x32xf32> to vector<1x32xf32>
    %c1_190 = arith.constant 1 : index
    %c0_191 = arith.constant 0 : index
    %c0_192 = arith.constant 0 : index
    %420 = vector.load %arg15[%c1_190, %c0_191, %c0_192] : memref<2x1x32xf32, #tpu.memory_space<vmem>>, vector<1x1x32xf32>
    %421 = vector.shape_cast %420 : vector<1x1x32xf32> to vector<1x32xf32>
    %cst_193 = arith.constant dense<0.000000e+00> : vector<16xf32>
    %422 = vector.multi_reduction <add>, %417, %cst_193 [1] : vector<16x32xf32> to vector<16xf32>
    %423 = vector.shape_cast %422 : vector<16xf32> to vector<16x1xf32>
    %cst_194 = arith.constant 3.200000e+01 : f32
    %424 = vector.broadcast %cst_194 : f32 to vector<16x1xf32>
    %425 = arith.divf %423, %424 : vector<16x1xf32>
    %426 = vector.broadcast %425 : vector<16x1xf32> to vector<16x32xf32>
    %427 = arith.subf %417, %426 : vector<16x32xf32>
    %428 = vector.broadcast %425 : vector<16x1xf32> to vector<16x32xf32>
    %429 = arith.subf %417, %428 : vector<16x32xf32>
    %430 = arith.mulf %427, %429 : vector<16x32xf32>
    %cst_195 = arith.constant dense<0.000000e+00> : vector<16xf32>
    %431 = vector.multi_reduction <add>, %430, %cst_195 [1] : vector<16x32xf32> to vector<16xf32>
    %432 = vector.shape_cast %431 : vector<16xf32> to vector<16x1xf32>
    %cst_196 = arith.constant 3.200000e+01 : f32
    %433 = vector.broadcast %cst_196 : f32 to vector<16x1xf32>
    %434 = arith.divf %432, %433 : vector<16x1xf32>
    %435 = vector.broadcast %425 : vector<16x1xf32> to vector<16x32xf32>
    %436 = arith.subf %417, %435 : vector<16x32xf32>
    %cst_197 = arith.constant 9.99999996E-13 : f32
    %437 = vector.broadcast %cst_197 : f32 to vector<16x1xf32>
    %438 = arith.addf %434, %437 : vector<16x1xf32>
    %439 = math.rsqrt %438 : vector<16x1xf32>
    %440 = vector.broadcast %439 : vector<16x1xf32> to vector<16x32xf32>
    %441 = arith.mulf %436, %440 : vector<16x32xf32>
    %442 = vector.broadcast %419 : vector<1x32xf32> to vector<16x32xf32>
    %443 = arith.mulf %441, %442 : vector<16x32xf32>
    %444 = vector.broadcast %421 : vector<1x32xf32> to vector<16x32xf32>
    %445 = arith.addf %443, %444 : vector<16x32xf32>
    %446 = vector.extract_strided_slice %445 {offsets = [0, 0], sizes = [1, 32], strides = [1, 1]} : vector<16x32xf32> to vector<1x32xf32>
    %c0_198 = arith.constant 0 : index
    %c0_199 = arith.constant 0 : index
    %447 = vector.load %arg22[%c0_198, %c0_199] : memref<2x32xf32, #tpu.memory_space<vmem>>, vector<1x32xf32>
    tpu.vector_store %arg22[%c0_198, %c0_199], %446 {strides = array<i32>} : memref<2x32xf32, #tpu.memory_space<vmem>>, vector<1x32xf32>,
    %448 = vector.extract_strided_slice %445 {offsets = [8, 0], sizes = [1, 32], strides = [1, 1]} : vector<16x32xf32> to vector<1x32xf32>
    %c1_200 = arith.constant 1 : index
    %c0_201 = arith.constant 0 : index
    %449 = vector.load %arg22[%c1_200, %c0_201] : memref<2x32xf32, #tpu.memory_space<vmem>>, vector<1x32xf32>
    tpu.vector_store %arg22[%c1_200, %c0_201], %448 {strides = array<i32>} : memref<2x32xf32, #tpu.memory_space<vmem>>, vector<1x32xf32>,
    %c0_202 = arith.constant 0 : index
    %c0_203 = arith.constant 0 : index
    %450 = vector.load %arg22[%c0_202, %c0_203] : memref<2x32xf32, #tpu.memory_space<vmem>>, vector<2x32xf32>
    %c0_204 = arith.constant 0 : index
    %c0_205 = arith.constant 0 : index
    %451 = vector.load %arg16[%c0_204, %c0_205] : memref<32x32xf32, #tpu.memory_space<vmem>>, vector<32x32xf32>
    %cst_206 = arith.constant dense<0.000000e+00> : vector<2x32xf32>
    %452 = tpu.matmul %450, %451, %cst_206 {dimension_numbers = #tpu.dot_dimension_numbers<[1], [0], [0], [1], [0, 0, 1, 1], [], []>} : vector<2x32xf32>, vector<32x32xf32>, vector<2x32xf32> -> vector<2x32xf32>
    %c0_207 = arith.constant 0 : index
    %c0_208 = arith.constant 0 : index
    %453 = vector.load %arg17[%c0_207, %c0_208] : memref<1x32xf32, #tpu.memory_space<vmem>>, vector<1x32xf32>
    %454 = vector.broadcast %453 : vector<1x32xf32> to vector<2x32xf32>
    %455 = arith.addf %452, %454 : vector<2x32xf32>
    %456 = math.tanh %455 : vector<2x32xf32>
    %c0_209 = arith.constant 0 : index
    %c0_210 = arith.constant 0 : index
    %457 = vector.load %arg18[%c0_209, %c0_210] : memref<32x3xf32, #tpu.memory_space<vmem>>, vector<32x3xf32>
    %cst_211 = arith.constant dense<0.000000e+00> : vector<2x3xf32>
    %458 = tpu.matmul %456, %457, %cst_211 {dimension_numbers = #tpu.dot_dimension_numbers<[1], [0], [0], [1], [0, 0, 1, 1], [], []>} : vector<2x32xf32>, vector<32x3xf32>, vector<2x3xf32> -> vector<2x3xf32>
    %c0_212 = arith.constant 0 : index
    %c0_213 = arith.constant 0 : index
    %459 = vector.load %arg19[%c0_212, %c0_213] : memref<1x3xf32, #tpu.memory_space<vmem>>, vector<1x3xf32>
    %460 = vector.broadcast %459 : vector<1x3xf32> to vector<2x3xf32>
    %461 = arith.addf %458, %460 : vector<2x3xf32>
    %c0_214 = arith.constant 0 : index
    %c0_215 = arith.constant 0 : index
    %462 = vector.load %arg20[%c0_214, %c0_215] : memref<2x3xf32, #tpu.memory_space<vmem>>, vector<2x3xf32>
    tpu.vector_store %arg20[%c0_214, %c0_215], %461 {strides = array<i32>} : memref<2x3xf32, #tpu.memory_space<vmem>>, vector<2x3xf32>,
    return
  }
}

</mosaic_0001>

<bundles_post_ra>
// kernel: bert_class_forward.1
= control target key start
LH: loop header
LB: loop body
LE: loop exit
PB: predicated region body
PF: predicated region fallthrough
CT: control target
= control target key end

     0   :  { %s3892_s0 = inlined_call_operand.vmem [shape: f32[16,32], index: 0, kind: input, shape index: {}]   ;;  %s3893_s1 = inlined_call_operand.vmem [shape: f32[2,8], index: 1, kind: input, shape index: {}]   ;;  %s3894_s2 = inlined_call_operand.vmem [shape: f32[1,32], index: 2, kind: input, shape index: {}]   ;;  %s3895_s3 = inlined_call_operand.vmem [shape: f32[1,32], index: 3, kind: input, shape index: {}]   ;;  %s3896_s4 = inlined_call_operand.vmem [shape: f32[2,32,96], index: 4, kind: input, shape index: {}]   ;;  %s3897_s5 = inlined_call_operand.vmem [shape: f32[2,1,96], index: 5, kind: input, shape index: {}]   ;;  %s3898_s6 = inlined_call_operand.vmem [shape: f32[2,32,32], index: 6, kind: input, shape index: {}]   ;;  %s3899_s7 = inlined_call_operand.vmem [shape: f32[2,1,32], index: 7, kind: input, shape index: {}]   ;;  %s3900_s8 = inlined_call_operand.vmem [shape: f32[2,1,32], index: 8, kind: input, shape index: {}]   ;;  %s3901_s9 = inlined_call_operand.vmem [shape: f32[2,1,32], index: 9, kind: input, shape index: {}]   ;;  %s3902_s10 = inlined_call_operand.vmem [shape: f32[2,32,64], index: 10, kind: input, shape index: {}]   ;;  %s3903_s11 = inlined_call_operand.vmem [shape: f32[2,1,64], index: 11, kind: input, shape index: {}]   ;;  %s3904_s12 = inlined_call_operand.vmem [shape: f32[2,64,32], index: 12, kind: input, shape index: {}]   ;;  %s3905_s13 = inlined_call_operand.vmem [shape: f32[2,1,32], index: 13, kind: input, shape index: {}]   ;;  %s3906_s14 = inlined_call_operand.vmem [shape: f32[2,1,32], index: 14, kind: input, shape index: {}]   ;;  %s3907_s15 = inlined_call_operand.vmem [shape: f32[2,1,32], index: 15, kind: input, shape index: {}]   ;;  %s3908_s16 = inlined_call_operand.vmem [shape: f32[32,32], index: 16, kind: input, shape index: {}]   ;;  %s3909_s17 = inlined_call_operand.vmem [shape: f32[1,32], index: 17, kind: input, shape index: {}]   ;;  %s3910_s18 = inlined_call_operand.vmem [shape: f32[32,3], index: 18, kind: input, shape index: {}]   ;;  %s3911_s19 = inlined_call_operand.vmem [shape: f32[1,3], index: 19, kind: input, shape index: {}]   ;;  %s3912_s20 = inlined_call_operand.hbm [shape: f32[2,3], index: 20, kind: output, shape index: {}]  }
   0x1   :  { %3915 = sst [smem:[#allocation7_spill]] %s3892_s0 }
   0x2   :  { %3916 = sst [smem:[#allocation8_spill]] %s3893_s1 }
   0x3   :  { %3917 = sst [smem:[#allocation9_spill]] %s3894_s2 }
   0x4   :  { %3918 = sst [smem:[#allocation10_spill]] %s3895_s3 }
   0x5   :  { %3919 = sst [smem:[#allocation11_spill]] %s3896_s4 }
   0x6   :  { %s3920_s23 = sld [smem:[#allocation7_spill]]  ;;  %vm70_vm0 = vcmask 261120  }
   0xc   :  { %v66_v0 = vld [vmem:[%s3920_s23] sm:$0xff]  ;;  %v67_v1 = vld [vmem:[%s3920_s23 + $0x8] sm:$0xff] }
   0xd   :  { %25 = vsyncpa [#allocation5], 0  ;;  %v71_v2 = vsel %vm70_vm0, %v66_v0, 0.0  ;;  %v74_v3 = vsel %vm70_vm0, %v67_v1, 0.0  ;;  %s3921_s26 = sld [smem:[#allocation11_spill]]  ;;  %s3922_s22 = sld [smem:[#allocation9_spill]]  ;;  %v286_v48 = vlaneseq }
   0xe   :  { %72 = vadd.xlane.f32.xlu0 %v71_v2  ;;  %s3923_s2 = sld [smem:[#allocation10_spill]]  ;;  %v3314_v36 = vmov 0.0   ;;  %vm3315_vm1 = vmmov 0   ;;  %v2726_v37 = vld [vmem:[%s3897_s5] ss:$0 sm:$0xff]  ;;  %s3316_s27 = smov 80  }
   0xf   :  { %2923 = vmatprep.subr.mxu1 %v3314_v36  ;;  %2925 = vmatprep.mubr.msk.f32.mxu1 %vm3315_vm1, %v3314_v36  ;;  %s3317_s28 = smov 96   ;;  %s3318_s4 = smov 112   ;;  %vm210_vm2 = vcmask 130048   ;;  %v287_v49 = vshrl.u32 %v286_v48, 7  ;;  %vm291_vm3 = vcmask 64512   ;;  %vm551_vm4 = vcmask 261248  }
  0x10   :  { %s3924_s0 = sld [smem:[#allocation8_spill]]  ;;  %s3319_s21 = smov 48   ;;  %vm1197_vm7 = vcmask 523264   ;;  %vm2535_vm10 = vcmask 253952   ;;  %vm2708_vm11 = vcmask 17408  }
  0x11   :  { %v288_v50 = vsub.s32 0, %v287_v49  ;;  %v633_v60 = vsub.s32 1, %v287_v49  ;;  %s3320_s1 = smov 64  }
  0x12   :  { %75 = vadd.xlane.f32.xlu0 %v74_v3 }
  0x13   :  { %v115_v14 = vld [vmem:[%s3921_s26] sm:$0xff]  ;;  %v116_v15 = vld [vmem:[%s3921_s26 + $0x8] sm:$0xff]  ;;  %v117_v16 = vld [vmem:[%s3921_s26 + $0x10] sm:$0xff] }
  0x14   :  { %v3118_v17 = vpack.c.bf16 %v116_v15, %v115_v14  ;;  %v118_v18 = vld [vmem:[%s3921_s26 + $0x18] sm:$0xff]  ;;  %v2724_v27 = vld [vmem:[%s3922_s22] ss:$0 sm:$0xff]  ;;  %s3321_s22 = smov 16  }
  0x15   :  { %v3122_v19 = vpack.c.bf16 %v118_v18, %v117_v16  ;;  %v2725_v29 = vld [vmem:[%s3923_s2] ss:$0 sm:$0xff] }
  0x16   :  { %3119 = vmatprep.subr.bf16.mxu0 %v3118_v17  ;;  %v114_v51 = vld [vmem:[%s3924_s0] sm:$0x3] }
  0x17   :  { %3121 = vmatpush3.bf16.msra.mxu0 %v3118_v17  ;;  %v3512_v52 = vrot.slane %v114_v51, %v288_v50 }
  0x18   :  { %3123 = vmatprep.subr.bf16.mxu0 %v3122_v19 }
  0x1b   :  { %3125 = vmatpush3.bf16.msra.mxu0 %v3122_v19 }
  0x1c   :  { %2933 = vmatprep.subr.mxu0 %v3314_v36 }
  0x9b   :  { %v73_v4 = vpop.xlane.xlu0 %72 }
  0x9c   :  { %v78_v5 = vmul.f32 0.03125, %v73_v4 }
  0x9e   :  { %v80_v6 = vsub.f32 %v66_v0, %v78_v5  ;;  %v3518_v0 = vrot.slane %v114_v51, %v633_v60  ;;  %v900_v60 = vld [vmem:[%s3898_s6 + $0x10] sm:$0xff] }
  0x9f   :  { %v76_v7 = vpop.xlane.xlu0 %75 }
  0xa0   :  { %v79_v8 = vmul.f32 0.03125, %v76_v7  ;;  %v82_v9 = vmul.f32 %v80_v6, %v80_v6 }
  0xa2   :  { %v81_v10 = vsub.f32 %v67_v1, %v79_v8  ;;  %v84_v11 = vsel %vm70_vm0, %v82_v9, 0.0 }
  0xa3   :  { %85 = vadd.xlane.f32.xlu1 %v84_v11 }
  0xa4   :  { %v83_v12 = vmul.f32 %v81_v10, %v81_v10 }
  0xa6   :  { %v87_v13 = vsel %vm70_vm0, %v83_v12, 0.0 }
  0xa7   :  { %88 = vadd.xlane.f32.xlu1 %v87_v13 }
 0x130   :  { %v86_v20 = vpop.xlane.xlu1 %85 }
 0x131   :  { %v90_v21 = vmul.f32 0.03125, %v86_v20 }
 0x133   :  { %v92_v22 = vadd.f32 1e-12, %v90_v21 }
 0x134   :  { %v89_v23 = vpop.xlane.xlu1 %88 }
 0x135   :  { %3220 = vrsqrt.f32 %v92_v22  ;;  %v91_v24 = vmul.f32 0.03125, %v89_v23 }
 0x137   :  { %v93_v25 = vadd.f32 1e-12, %v91_v24 }
 0x139   :  { %3222 = vrsqrt.f32 %v93_v25 }
 0x13f   :  { %v3221_v26 = vpop.eup %3220 }
 0x140   :  { %v96_v28 = vmul.f32 %v3221_v26, %v80_v6 }
 0x142   :  { %v104_v30 = vmul.f32 %v2724_v27, %v96_v28 }
 0x143   :  { %v3223_v31 = vpop.eup %3222 }
 0x144   :  { %v97_v32 = vmul.f32 %v3223_v31, %v81_v10  ;;  %v3457_v33 = vadd.f32 %v2725_v29, %v104_v30 }
 0x146   :  { %v105_v34 = vmul.f32 %v2724_v27, %v97_v32  ;;  %2920 = vmatprep.mubr.msk.f32.mxu0 %vm70_vm0, %v3457_v33 }
 0x148   :  { %v3461_v35 = vadd.f32 %v2725_v29, %v105_v34 }
 0x14a   :  { %2921 = vmatmul.mubr.msk.f32.vlgmr.msra.gmra.mrb[0].mxu0 %vm70_vm0, %v3461_v35 }
 0x14b   :  { %2935 = vmatprep.mubr.msk.f32.mxu0 %vm3315_vm1, %v3314_v36 }
 0x21d   :  { %v2922_v38 = vpop.f32.mrb[0].mxu0 }
 0x21e   :  { %v198_v39 = vpop.f32.mrb[1].mxu0  ;;  %v3480_v41 = vadd.f32 %v2922_v38, %v2726_v37 }
 0x21f   :  { %v3474_v40 = vadd.f32 %v2726_v37, %v198_v39 }
 0x221   :  { %382 = vrot.lane.b32.xlu1 %v3474_v40, %s3316_s27  ;;  %208 = vrot.lane.b32.xlu0 %v3474_v40, %s3317_s28 }
 0x225   :  { %380 = vrot.lane.b32.xlu1 %v3474_v40, %s3318_s4  ;;  %726 = vrot.lane.b32.xlu0 %v3480_v41, %s3316_s27 }
 0x229   :  { %554 = vrot.lane.b32.xlu1 %v3480_v41, %s3317_s28 }
 0x22d   :  { %724 = vrot.lane.b32.xlu1 %v3480_v41, %s3318_s4 }
 0x293   :  { %v383_v42 = vpop.permute.xlu1 %382  ;;  %v209_v43 = vpop.permute.xlu0 %208 }
 0x294   :  { %2924 = vmatpush3.xpose.msk.msra.mxu1 %vm210_vm2, %v209_v43  ;;  %2934 = vmatpush3.xpose.msk.msra.mxu0 %vm210_vm2, %v383_v42 }
 0x295   :  { %2943 = vmatprep.subr.mxu0 %v3314_v36  ;;  %2928 = vmatprep.subr.mxu1 %v3314_v36 }
 0x297   :  { %v381_v44 = vpop.permute.xlu1 %380  ;;  %2926 = vmatmul.mubr.msk.f32.vlgmr.msra.gmra.mrb[0].mxu1 %vm210_vm2, %v3474_v40  ;;  %v727_v46 = vpop.permute.xlu0 %726 }
 0x298   :  { %2936 = vmatmul.mubr.msk.f32.vlgmr.msra.gmra.mrb[2].mxu0 %vm210_vm2, %v381_v44  ;;  %2930 = vmatprep.mubr.msk.f32.mxu1 %vm3315_vm1, %v3314_v36 }
 0x299   :  { %2945 = vmatprep.mubr.msk.f32.mxu0 %vm3315_vm1, %v3314_v36 }
 0x29b   :  { %v555_v45 = vpop.permute.xlu1 %554 }
 0x29c   :  { %2944 = vmatpush3.xpose.msk.msra.mxu0 %vm210_vm2, %v555_v45 }
 0x29d   :  { %2953 = vmatprep.subr.mxu0 %v3314_v36 }
 0x29f   :  { %2946 = vmatmul.mubr.msk.f32.vlgmr.msra.gmra.mrb[4].mxu0 %vm210_vm2, %v3480_v41  ;;  %v725_v47 = vpop.permute.xlu1 %724 }
 0x2a0   :  { %2954 = vmatpush3.xpose.msk.msra.mxu0 %vm210_vm2, %v727_v46  ;;  %2955 = vmatprep.mubr.msk.f32.mxu0 %vm3315_vm1, %v3314_v36 }
 0x2a3   :  { %2956 = vmatmul.mubr.msk.f32.vlgmr.msra.gmra.mrb[6].mxu0 %vm210_vm2, %v725_v47 }
 0x36a   :  { %v281_v53 = vpop.f32.mrb[0].mxu1 }
 0x36b   :  { %v285_v54 = vmul.f32 0.25, %v281_v53  ;;  %v2927_v55 = vpop.f32.mrb[1].mxu1  ;;  %v454_v56 = vpop.f32.mrb[2].mxu0 }
 0x36c   :  { %v458_v57 = vmul.f32 0.25, %v454_v56  ;;  %v2937_v58 = vpop.f32.mrb[3].mxu0 }
 0x36d   :  { %v290_v59 = vadd.f32 %v3512_v52, %v285_v54  ;;  %v899_v58 = vld [vmem:[%s3898_s6 + $0x8] sm:$0xff] }
 0x36e   :  { %v459_v61 = vadd.f32 %v458_v57, %v3512_v52  ;;  %v898_v57 = vld [vmem:[%s3898_s6] sm:$0xff] }
 0x36f   :  { %v292_v62 = vsel %vm291_vm3, %v290_v59, -inf }
 0x370   :  { %293 = vmax.xlane.f32.xlu0 %v292_v62  ;;  %v460_v63 = vsel %vm291_vm3, %v459_v61, -inf }
 0x371   :  { %461 = vmax.xlane.f32.xlu1 %v460_v63 }
 0x372   :  { %v626_v1 = vpop.f32.mrb[4].mxu0 }
 0x373   :  { %v630_v2 = vmul.f32 0.25, %v626_v1  ;;  %v2947_v3 = vpop.f32.mrb[5].mxu0 }
 0x375   :  { %v635_v4 = vadd.f32 %v3518_v0, %v630_v2 }
 0x376   :  { %v798_v5 = vpop.f32.mrb[6].mxu0 }
 0x377   :  { %v802_v6 = vmul.f32 0.25, %v798_v5  ;;  %v2957_v7 = vpop.f32.mrb[7].mxu0  ;;  %v636_v8 = vsel %vm291_vm3, %v635_v4, -inf }
 0x378   :  { %637 = vmax.xlane.f32.xlu0 %v636_v8 }
 0x379   :  { %v803_v9 = vadd.f32 %v802_v6, %v3518_v0  ;;  %v2741_v6 = vld [vmem:[%s3899_s7] ss:$0 sm:$0xff] }
 0x37b   :  { %v804_v10 = vsel %vm291_vm3, %v803_v9, -inf }
 0x37c   :  { %805 = vmax.xlane.f32.xlu0 %v804_v10 }
 0x3fd   :  { %v294_v11 = vpop.xlane.xlu0 %293 }
 0x3fe   :  { %v295_v12 = vsub.f32 %v290_v59, %v294_v11  ;;  %v462_v13 = vpop.xlane.xlu1 %461  ;;  %v3126_v59 = vpack.c.bf16 %v899_v58, %v898_v57  ;;  %v1188_v58 = vld [vmem:[%s3904_s12 + $0x30] sm:$0xff] }
 0x3ff   :  { %v463_v14 = vsub.f32 %v459_v61, %v462_v13  ;;  %v901_v61 = vld [vmem:[%s3898_s6 + $0x18] sm:$0xff] }
 0x400   :  { %v296_v15 = vmul.f32 1.442695, %v295_v12  ;;  %3127 = vmatprep.subr.bf16.mxu0 %v3126_v59  ;;  %v3130_v62 = vpack.c.bf16 %v901_v61, %v900_v60  ;;  %v2746_v61 = vld [vmem:[%s3903_s11] ss:$0 sm:$0xff] }
 0x401   :  { %v464_v16 = vmul.f32 1.442695, %v463_v14  ;;  %3129 = vmatpush3.bf16.msra.mxu0 %v3126_v59  ;;  %v1189_v59 = vld [vmem:[%s3904_s12 + $0x38] sm:$0xff] }
 0x402   :  { %3224 = vpow2.f32 %v296_v15  ;;  %3131 = vmatprep.subr.bf16.mxu0 %v3130_v62  ;;  %v3154_v60 = vpack.c.bf16 %v1189_v59, %v1188_v58 }
 0x403   :  { %3226 = vpow2.f32 %v464_v16 }
 0x405   :  { %v638_v17 = vpop.xlane.xlu0 %637  ;;  %3133 = vmatpush3.bf16.msra.mxu0 %v3130_v62 }
 0x406   :  { %v639_v18 = vsub.f32 %v635_v4, %v638_v17 }
 0x408   :  { %v640_v19 = vmul.f32 1.442695, %v639_v18 }
 0x409   :  { %v806_v26 = vpop.xlane.xlu0 %805 }
 0x40a   :  { %3228 = vpow2.f32 %v640_v19  ;;  %v807_v27 = vsub.f32 %v803_v9, %v806_v26  ;;  %v1038_v26 = vld [vmem:[%s3902_s10 + $0x10] sm:$0xff] }
 0x40c   :  { %v3225_v20 = vpop.eup %3224  ;;  %v808_v28 = vmul.f32 1.442695, %v807_v27  ;;  %v1039_v27 = vld [vmem:[%s3902_s10 + $0x18] sm:$0xff] }
 0x40d   :  { %v3227_v21 = vpop.eup %3226  ;;  %v298_v22 = vsel %vm291_vm3, %v3225_v20, 0.0 }
 0x40e   :  { %299 = vadd.xlane.f32.xlu0 %v298_v22  ;;  %v466_v23 = vsel %vm291_vm3, %v3227_v21, 0.0  ;;  %3230 = vpow2.f32 %v808_v28  ;;  %v3138_v28 = vpack.c.bf16 %v1039_v27, %v1038_v26 }
 0x40f   :  { %467 = vadd.xlane.f32.xlu1 %v466_v23 }
 0x414   :  { %v3229_v24 = vpop.eup %3228 }
 0x415   :  { %v642_v25 = vsel %vm291_vm3, %v3229_v24, 0.0 }
 0x416   :  { %643 = vadd.xlane.f32.xlu0 %v642_v25 }
 0x418   :  { %v3231_v29 = vpop.eup %3230 }
 0x419   :  { %v810_v30 = vsel %vm291_vm3, %v3231_v29, 0.0 }
 0x420   :  { %471 = vrot.lane.b32.xlu1 %v3474_v40, %s3319_s21 }
 0x424   :  { %647 = vrot.lane.b32.xlu1 %v3480_v41, %s3320_s1 }
 0x42c   :  { %303 = vrot.lane.b32.xlu0 %v3474_v40, %s3320_s1 }
 0x448   :  { %811 = vadd.xlane.f32.xlu1 %v810_v30 }
 0x459   :  { %815 = vrot.lane.b32.xlu1 %v3480_v41, %s3319_s21 }
 0x49b   :  { %v300_v31 = vpop.xlane.xlu0 %299 }
 0x49c   :  { %3232 = vrcp.f32 %v300_v31  ;;  %v468_v32 = vpop.xlane.xlu1 %467 }
 0x49d   :  { %3234 = vrcp.f32 %v468_v32 }
 0x4a0   :  { %v472_v39 = vpop.permute.xlu1 %471 }
 0x4a3   :  { %v644_v34 = vpop.xlane.xlu0 %643 }
 0x4a4   :  { %3236 = vrcp.f32 %v644_v34  ;;  %v648_v43 = vpop.permute.xlu1 %647 }
 0x4a6   :  { %v3233_v37 = vpop.eup %3232 }
 0x4a7   :  { %v302_v38 = vmul.f32 %v3233_v37, %v3225_v20  ;;  %v304_v40 = vpop.permute.xlu0 %303  ;;  %v3235_v42 = vpop.eup %3234 }
 0x4a8   :  { %2929 = vmatpush3.msra.mxu1 %v304_v40  ;;  %v470_v41 = vmul.f32 %v3235_v42, %v3227_v21  ;;  %v2745_v42 = vld [vmem:[%s3901_s9] ss:$0 sm:$0xff] }
 0x4a9   :  { %2931 = vmatmul.mubr.msk.f32.vlgmr.msra.gmra.mrb[2].mxu1 %vm291_vm3, %v302_v38  ;;  %2938 = vmatprep.subr.mxu1 %v3314_v36 }
 0x4aa   :  { %2939 = vmatpush3.msra.mxu1 %v472_v39  ;;  %2940 = vmatprep.mubr.msk.f32.mxu1 %vm3315_vm1, %v3314_v36  ;;  %v2744_v39 = vld [vmem:[%s3900_s8] ss:$0 sm:$0xff] }
 0x4ab   :  { %2948 = vmatprep.subr.mxu1 %v3314_v36 }
 0x4ad   :  { %2941 = vmatmul.mubr.msk.f32.vlgmr.msra.gmra.mrb[4].mxu1 %vm291_vm3, %v470_v41 }
 0x4ae   :  { %v3237_v44 = vpop.eup %3236  ;;  %2949 = vmatpush3.msra.mxu1 %v648_v43  ;;  %2950 = vmatprep.mubr.msk.f32.mxu1 %vm3315_vm1, %v3314_v36 }
 0x4af   :  { %v646_v45 = vmul.f32 %v3237_v44, %v3229_v24  ;;  %2958 = vmatprep.subr.mxu1 %v3314_v36  ;;  %v1037_v24 = vld [vmem:[%s3902_s10 + $0x8] sm:$0xff] }
 0x4b1   :  { %2951 = vmatmul.mubr.msk.f32.vlgmr.msra.gmra.mrb[6].mxu1 %vm291_vm3, %v646_v45 }
 0x4b2   :  { %2960 = vmatprep.mubr.msk.f32.mxu1 %vm3315_vm1, %v3314_v36 }
 0x4d5   :  { %v812_v46 = vpop.xlane.xlu1 %811 }
 0x4d6   :  { %3238 = vrcp.f32 %v812_v46 }
 0x4d9   :  { %v816_v47 = vpop.permute.xlu1 %815 }
 0x4da   :  { %2959 = vmatpush3.msra.mxu1 %v816_v47 }
 0x4e0   :  { %v3239_v48 = vpop.eup %3238 }
 0x4e1   :  { %v814_v49 = vmul.f32 %v3239_v48, %v3231_v29  ;;  %v1182_v48 = vld [vmem:[%s3904_s12] sm:$0xff] }
 0x4e3   :  { %2961 = vmatmul.mubr.msk.f32.vlgmr.msra.gmra.mrb[8].mxu1 %vm291_vm3, %v814_v49  ;;  %v1183_v49 = vld [vmem:[%s3904_s12 + $0x8] sm:$0xff] }
 0x57c   :  { %v375_v50 = vpop.f32.mrb[2].mxu1 }
 0x57d   :  { %379 = vst.msk [vmem:[#allocation2] sm:$0xff] %vm210_vm2, %v375_v50  ;;  %v2932_v51 = vpop.f32.mrb[3].mxu1  ;;  %v3142_v50 = vpack.c.bf16 %v1183_v49, %v1182_v48 }
 0x57e   :  { %v1184_v51 = vld [vmem:[%s3904_s12 + $0x10] sm:$0xff] }
 0x57f   :  { %3143 = vmatprep.subr.bf16.mxu0 %v3142_v50 }
 0x580   :  { %v543_v53 = vpop.f32.mrb[4].mxu1 }
 0x581   :  { %548 = vrot.lane.b32.xlu0 %v543_v53, %s3321_s22  ;;  %v2942_v54 = vpop.f32.mrb[5].mxu1  ;;  %v1185_v53 = vld [vmem:[%s3904_s12 + $0x18] sm:$0xff] }
 0x582   :  { %v3146_v54 = vpack.c.bf16 %v1185_v53, %v1184_v51 }
 0x584   :  { %v719_v55 = vpop.f32.mrb[6].mxu1 }
 0x585   :  { %723 = vst.msk [vmem:[#allocation2 + $0x8] sm:$0xff] %vm210_vm2, %v719_v55  ;;  %v2952_v56 = vpop.f32.mrb[7].mxu1  ;;  %v1186_v55 = vld [vmem:[%s3904_s12 + $0x20] sm:$0xff] }
 0x586   :  { %v1187_v56 = vld [vmem:[%s3904_s12 + $0x28] sm:$0xff] }
 0x587   :  { %v3150_v57 = vpack.c.bf16 %v1187_v56, %v1186_v55 }
 0x5b6   :  { %v887_v63 = vpop.f32.mrb[8].mxu1 }
 0x5b7   :  { %892 = vrot.lane.b32.xlu1 %v887_v63, %s3321_s22  ;;  %v2962_v1 = vpop.f32.mrb[9].mxu1 }
 0x5f3   :  { %v549_v2 = vpop.permute.xlu0 %548 }
 0x5f4   :  { %552 = vst.msk [vmem:[#allocation2] sm:$0xff] %vm551_vm4, %v549_v2 }
 0x5fb   :  { %v896_v3 = vld [vmem:[#allocation2] sm:$0xff] }
 0x5fc   :  { %2971 = vmatprep.mubr.msk.f32.mxu0 %vm70_vm0, %v896_v3 }
 0x629   :  { %v893_v4 = vpop.permute.xlu1 %892 }
 0x62a   :  { %895 = vst.msk [vmem:[#allocation2 + $0x8] sm:$0xff] %vm551_vm4, %v893_v4 }
 0x631   :  { %v897_v5 = vld [vmem:[#allocation2 + $0x8] sm:$0xff] }
 0x632   :  { %2972 = vmatmul.mubr.msk.f32.vlgmr.msra.gmra.mrb[8].mxu0 %vm70_vm0, %v897_v5 }
 0x633   :  { %3145 = vmatpush3.bf16.msra.mxu0 %v3142_v50 }
 0x634   :  { %3147 = vmatprep.subr.bf16.mxu0 %v3146_v54 }
 0x637   :  { %3149 = vmatpush3.bf16.msra.mxu0 %v3146_v54 }
 0x638   :  { %3151 = vmatprep.subr.bf16.mxu0 %v3150_v57 }
 0x63b   :  { %3153 = vmatpush3.bf16.msra.mxu0 %v3150_v57  ;;  %v2749_v57 = vld [vmem:[%s3905_s13] ss:$0 sm:$0xff] }
 0x63c   :  { %3155 = vmatprep.subr.bf16.mxu0 %v3154_v60 }
 0x63f   :  { %3157 = vmatpush3.bf16.msra.mxu0 %v3154_v60 }
 0x640   :  { %3025 = vmatprep.subr.mxu0 %v3314_v36 }
 0x705   :  { %v2973_v7 = vpop.f32.mrb[8].mxu0 }
 0x706   :  { %v987_v8 = vadd.f32 %v2973_v7, %v2741_v6  ;;  %v981_v9 = vpop.f32.mrb[9].mxu0 }
 0x707   :  { %v982_v10 = vadd.f32 %v2741_v6, %v981_v9 }
 0x708   :  { %v991_v11 = vadd.f32 %v987_v8, %v3461_v35 }
 0x709   :  { %v990_v12 = vadd.f32 %v982_v10, %v3457_v33  ;;  %v1036_v33 = vld [vmem:[%s3902_s10] sm:$0xff] }
 0x70a   :  { %v997_v13 = vsel %vm70_vm0, %v991_v11, 0.0  ;;  %v3134_v25 = vpack.c.bf16 %v1037_v24, %v1036_v33 }
 0x70b   :  { %998 = vadd.xlane.f32.xlu1 %v997_v13  ;;  %v994_v14 = vsel %vm70_vm0, %v990_v12, 0.0 }
 0x70c   :  { %995 = vadd.xlane.f32.xlu0 %v994_v14  ;;  %3135 = vmatprep.subr.bf16.mxu1 %v3134_v25 }
 0x70d   :  { %3137 = vmatpush3.bf16.msra.mxu1 %v3134_v25 }
 0x70e   :  { %3139 = vmatprep.subr.bf16.mxu1 %v3138_v28 }
 0x711   :  { %3141 = vmatpush3.bf16.msra.mxu1 %v3138_v28 }
 0x798   :  { %v999_v15 = vpop.xlane.xlu1 %998 }
 0x799   :  { %v1001_v16 = vmul.f32 0.03125, %v999_v15  ;;  %v996_v17 = vpop.xlane.xlu0 %995 }
 0x79a   :  { %v1000_v18 = vmul.f32 0.03125, %v996_v17 }
 0x79b   :  { %v1003_v19 = vsub.f32 %v991_v11, %v1001_v16 }
 0x79c   :  { %v1002_v20 = vsub.f32 %v990_v12, %v1000_v18 }
 0x79d   :  { %v1005_v23 = vmul.f32 %v1003_v19, %v1003_v19 }
 0x79e   :  { %v1004_v21 = vmul.f32 %v1002_v20, %v1002_v20 }
 0x79f   :  { %v1009_v35 = vsel %vm70_vm0, %v1005_v23, 0.0 }
 0x7a0   :  { %v1006_v22 = vsel %vm70_vm0, %v1004_v21, 0.0 }
 0x7a1   :  { %1007 = vadd.xlane.f32.xlu0 %v1006_v22 }
 0x7a5   :  { %1010 = vadd.xlane.f32.xlu0 %v1009_v35 }
 0x82e   :  { %v1008_v29 = vpop.xlane.xlu0 %1007 }
 0x82f   :  { %v1012_v30 = vmul.f32 0.03125, %v1008_v29 }
 0x831   :  { %v1014_v31 = vadd.f32 1e-12, %v1012_v30 }
 0x832   :  { %v1011_v32 = vpop.xlane.xlu0 %1010 }
 0x833   :  { %3240 = vrsqrt.f32 %v1014_v31  ;;  %v1013_v34 = vmul.f32 0.03125, %v1011_v32 }
 0x835   :  { %v1015_v37 = vadd.f32 1e-12, %v1013_v34 }
 0x837   :  { %3242 = vrsqrt.f32 %v1015_v37 }
 0x83d   :  { %v3241_v38 = vpop.eup %3240 }
 0x83e   :  { %v1018_v40 = vmul.f32 %v3241_v38, %v1002_v20 }
 0x840   :  { %v1026_v41 = vmul.f32 %v2744_v39, %v1018_v40 }
 0x841   :  { %v3243_v43 = vpop.eup %3242 }
 0x842   :  { %v1019_v44 = vmul.f32 %v3243_v43, %v1003_v19  ;;  %v3596_v45 = vadd.f32 %v2745_v42, %v1026_v41 }
 0x844   :  { %v1027_v46 = vmul.f32 %v2744_v39, %v1019_v44  ;;  %2982 = vmatprep.mubr.msk.f32.mxu1 %vm70_vm0, %v3596_v45 }
 0x846   :  { %v3600_v47 = vadd.f32 %v2745_v42, %v1027_v46 }
 0x848   :  { %2983 = vmatmul.mubr.msk.f32.vlgmr.msra.gmra.mrb[10].mxu1 %vm70_vm0, %v3600_v47 }
 0x91b   :  { %v2984_v62 = vpop.f32.mrb[10].mxu1 }
 0x91c   :  { %v1125_v63 = vadd.f32 %v2984_v62, %v2746_v61  ;;  %v1119_v1 = vpop.f32.mrb[11].mxu1 }
 0x91d   :  { %v1120_v2 = vadd.f32 %v2746_v61, %v1119_v1 }
 0x91e   :  { %v1131_v3 = vmul.f32 0.70710677, %v1125_v63  ;;  %v1129_v54 = vmul.f32 0.5, %v1125_v63 }
 0x91f   :  { %v1130_v4 = vmul.f32 0.70710677, %v1120_v2  ;;  %v1128_v51 = vmul.f32 0.5, %v1120_v2 }
 0x920   :  { %v1133_v5 = vand.u32 2147483647, %v1131_v3  ;;  %vm1173_vm5 = vcmp.ge.f32.partialorder %v1131_v3, 0.0 }
 0x921   :  { %v1132_v6 = vand.u32 2147483647, %v1130_v4  ;;  %vm1172_vm6 = vcmp.ge.f32.partialorder %v1130_v4, 0.0 }
 0x922   :  { %v1135_v7 = vmul.f32 0.3275911, %v1133_v5  ;;  %v1161_v11 = vsub.f32 0.0, %v1133_v5 }
 0x923   :  { %v1134_v8 = vmul.f32 0.3275911, %v1132_v6  ;;  %v1160_v12 = vsub.f32 0.0, %v1132_v6 }
 0x924   :  { %v1137_v9 = vadd.f32 1.0, %v1135_v7  ;;  %v1163_v14 = vmul.f32 %v1161_v11, %v1133_v5 }
 0x925   :  { %v1136_v10 = vadd.f32 1.0, %v1134_v8  ;;  %v1162_v17 = vmul.f32 %v1160_v12, %v1132_v6  ;;  %v2755_v12 = vld [vmem:[%s3921_s26 + $0x28] sm:$0xff] }
 0x926   :  { %3244 = vrcp.f32 %v1137_v9  ;;  %v1166_v20 = vmul.f32 1.442695, %v1163_v14  ;;  %v2756_v14 = vld [vmem:[%s3921_s26 + $0x30] sm:$0xff] }
 0x927   :  { %3246 = vrcp.f32 %v1136_v10  ;;  %v1164_v23 = vmul.f32 1.442695, %v1162_v17 }
 0x928   :  { %3248 = vpow2.f32 %v1166_v20 }
 0x929   :  { %3250 = vpow2.f32 %v1164_v23 }
 0x930   :  { %v3245_v13 = vpop.eup %3244 }
 0x931   :  { %v3247_v15 = vpop.eup %3246  ;;  %v1143_v16 = vmul.f32 1.0614054, %v3245_v13 }
 0x932   :  { %v1142_v18 = vmul.f32 1.0614054, %v3247_v15  ;;  %v3249_v37 = vpop.eup %3248 }
 0x933   :  { %v1145_v19 = vadd.f32 -1.4531521, %v1143_v16  ;;  %v3251_v39 = vpop.eup %3250 }
 0x934   :  { %v1144_v21 = vadd.f32 -1.4531521, %v1142_v18 }
 0x935   :  { %v1147_v22 = vmul.f32 %v3245_v13, %v1145_v19 }
 0x936   :  { %v1146_v35 = vmul.f32 %v3247_v15, %v1144_v21 }
 0x937   :  { %v1149_v33 = vadd.f32 1.4214138, %v1147_v22 }
 0x938   :  { %v1148_v24 = vadd.f32 1.4214138, %v1146_v35  ;;  %v2752_v35 = vld [vmem:[%s3906_s14] ss:$0 sm:$0xff] }
 0x939   :  { %v1151_v25 = vmul.f32 %v3245_v13, %v1149_v33 }
 0x93a   :  { %v1150_v26 = vmul.f32 %v3247_v15, %v1148_v24 }
 0x93b   :  { %v1153_v27 = vadd.f32 -0.28449672, %v1151_v25 }
 0x93c   :  { %v1152_v28 = vadd.f32 -0.28449672, %v1150_v26  ;;  %v2753_v26 = vld [vmem:[%s3907_s15] ss:$0 sm:$0xff] }
 0x93d   :  { %v1155_v29 = vmul.f32 %v3245_v13, %v1153_v27 }
 0x93e   :  { %v1154_v30 = vmul.f32 %v3247_v15, %v1152_v28 }
 0x93f   :  { %v1157_v31 = vadd.f32 0.2548296, %v1155_v29 }
 0x940   :  { %v1156_v32 = vadd.f32 0.2548296, %v1154_v30 }
 0x941   :  { %v1159_v34 = vmul.f32 %v3245_v13, %v1157_v31  ;;  %v2759_v31 = vld [vmem:[%s3897_s5 + $0x1] ss:$0 sm:$0xff] }
 0x942   :  { %v1158_v38 = vmul.f32 %v3247_v15, %v1156_v32  ;;  %v2757_v15 = vld [vmem:[%s3921_s26 + $0x38] sm:$0xff] }
 0x943   :  { %v1169_v40 = vmul.f32 %v3249_v37, %v1159_v34  ;;  %v3162_v16 = vpack.c.bf16 %v2757_v15, %v2756_v14 }
 0x944   :  { %v1168_v42 = vmul.f32 %v3251_v39, %v1158_v38 }
 0x945   :  { %v1171_v41 = vsub.f32 1.0, %v1169_v40 }
 0x946   :  { %v1170_v43 = vsub.f32 1.0, %v1168_v42 }
 0x947   :  { %v1175_v44 = vsub.f32 0.0, %v1171_v41 }
 0x948   :  { %v1174_v46 = vsub.f32 0.0, %v1170_v43 }
 0x949   :  { %v1177_v48 = vsel %vm1173_vm5, %v1171_v41, %v1175_v44 }
 0x94a   :  { %v1179_v49 = vadd.f32 1.0, %v1177_v48  ;;  %v1176_v50 = vsel %vm1172_vm6, %v1170_v43, %v1174_v46 }
 0x94b   :  { %v1178_v53 = vadd.f32 1.0, %v1176_v50 }
 0x94c   :  { %v1181_v56 = vmul.f32 %v1179_v49, %v1129_v54 }
 0x94d   :  { %v1180_v55 = vmul.f32 %v1178_v53, %v1128_v51 }
 0x94f   :  { %3001 = vmatprep.mubr.msk.f32.mxu0 %vm1197_vm7, %v1180_v55 }
 0x950   :  { %3002 = vmatmul.mubr.msk.f32.vlgmr.msra.gmra.mrb[10].mxu0 %vm1197_vm7, %v1181_v56 }
 0x951   :  { %3027 = vmatprep.mubr.msk.f32.mxu0 %vm3315_vm1, %v3314_v36 }
 0xa23   :  { %v3003_v58 = vpop.f32.mrb[10].mxu0 }
 0xa24   :  { %v1276_v59 = vadd.f32 %v3003_v58, %v2749_v57  ;;  %v1270_v60 = vpop.f32.mrb[11].mxu0 }
 0xa25   :  { %v1271_v61 = vadd.f32 %v2749_v57, %v1270_v60 }
 0xa26   :  { %v1280_v62 = vadd.f32 %v1276_v59, %v3600_v47 }
 0xa27   :  { %v1279_v63 = vadd.f32 %v1271_v61, %v3596_v45  ;;  %v2754_v45 = vld [vmem:[%s3921_s26 + $0x20] sm:$0xff] }
 0xa28   :  { %v1286_v1 = vsel %vm70_vm0, %v1280_v62, 0.0  ;;  %v3158_v13 = vpack.c.bf16 %v2755_v12, %v2754_v45 }
 0xa29   :  { %1287 = vadd.xlane.f32.xlu1 %v1286_v1  ;;  %v1283_v2 = vsel %vm70_vm0, %v1279_v63, 0.0 }
 0xa2a   :  { %1284 = vadd.xlane.f32.xlu0 %v1283_v2  ;;  %3159 = vmatprep.subr.bf16.mxu1 %v3158_v13 }
 0xa2b   :  { %3161 = vmatpush3.bf16.msra.mxu1 %v3158_v13 }
 0xa2c   :  { %3163 = vmatprep.subr.bf16.mxu1 %v3162_v16 }
 0xa2f   :  { %3165 = vmatpush3.bf16.msra.mxu1 %v3162_v16 }
 0xa30   :  { %3015 = vmatprep.subr.mxu1 %v3314_v36 }
 0xab6   :  { %v1288_v3 = vpop.xlane.xlu1 %1287 }
 0xab7   :  { %v1290_v4 = vmul.f32 0.03125, %v1288_v3  ;;  %v1285_v5 = vpop.xlane.xlu0 %1284 }
 0xab8   :  { %v1289_v6 = vmul.f32 0.03125, %v1285_v5 }
 0xab9   :  { %v1292_v7 = vsub.f32 %v1280_v62, %v1290_v4 }
 0xaba   :  { %v1291_v8 = vsub.f32 %v1279_v63, %v1289_v6 }
 0xabb   :  { %v1294_v9 = vmul.f32 %v1292_v7, %v1292_v7 }
 0xabc   :  { %v1293_v10 = vmul.f32 %v1291_v8, %v1291_v8 }
 0xabd   :  { %v1298_v11 = vsel %vm70_vm0, %v1294_v9, 0.0 }
 0xabe   :  { %1299 = vadd.xlane.f32.xlu1 %v1298_v11  ;;  %v1295_v47 = vsel %vm70_vm0, %v1293_v10, 0.0 }
 0xabf   :  { %1296 = vadd.xlane.f32.xlu0 %v1295_v47 }
 0xb4b   :  { %v1300_v17 = vpop.xlane.xlu1 %1299 }
 0xb4c   :  { %v1302_v18 = vmul.f32 0.03125, %v1300_v17  ;;  %v1297_v19 = vpop.xlane.xlu0 %1296 }
 0xb4d   :  { %v1301_v20 = vmul.f32 0.03125, %v1297_v19 }
 0xb4e   :  { %v1304_v21 = vadd.f32 1e-12, %v1302_v18 }
 0xb4f   :  { %v1303_v22 = vadd.f32 1e-12, %v1301_v20 }
 0xb50   :  { %3252 = vrsqrt.f32 %v1304_v21 }
 0xb51   :  { %3254 = vrsqrt.f32 %v1303_v22 }
 0xb5a   :  { %v3253_v23 = vpop.eup %3252 }
 0xb5b   :  { %v3255_v33 = vpop.eup %3254  ;;  %v1308_v24 = vmul.f32 %v3253_v23, %v1292_v7 }
 0xb5c   :  { %v1307_v25 = vmul.f32 %v3255_v33, %v1291_v8 }
 0xb5d   :  { %v1316_v27 = vmul.f32 %v2752_v35, %v1308_v24 }
 0xb5e   :  { %v1315_v28 = vmul.f32 %v2752_v35, %v1307_v25 }
 0xb5f   :  { %v3666_v30 = vadd.f32 %v2753_v26, %v1316_v27 }
 0xb60   :  { %v3664_v29 = vadd.f32 %v2753_v26, %v1315_v28 }
 0xb62   :  { %3012 = vmatprep.mubr.msk.f32.mxu1 %vm70_vm0, %v3664_v29 }
 0xb63   :  { %3013 = vmatmul.mubr.msk.f32.vlgmr.msra.gmra.mrb[12].mxu1 %vm70_vm0, %v3666_v30 }
 0xb64   :  { %3017 = vmatprep.mubr.msk.f32.mxu1 %vm3315_vm1, %v3314_v36 }
 0xc36   :  { %v3014_v32 = vpop.f32.mrb[12].mxu1 }
 0xc37   :  { %v1410_v34 = vpop.f32.mrb[13].mxu1  ;;  %v3683_v38 = vadd.f32 %v3014_v32, %v2759_v31 }
 0xc38   :  { %v3677_v37 = vadd.f32 %v2759_v31, %v1410_v34 }
 0xc3a   :  { %1588 = vrot.lane.b32.xlu1 %v3677_v37, %s3316_s27  ;;  %1420 = vrot.lane.b32.xlu0 %v3677_v37, %s3317_s28 }
 0xc3e   :  { %1586 = vrot.lane.b32.xlu1 %v3677_v37, %s3318_s4  ;;  %1927 = vrot.lane.b32.xlu0 %v3683_v38, %s3316_s27 }
 0xc42   :  { %1759 = vrot.lane.b32.xlu1 %v3683_v38, %s3317_s28 }
 0xc46   :  { %1925 = vrot.lane.b32.xlu1 %v3683_v38, %s3318_s4 }
 0xcac   :  { %v1589_v39 = vpop.permute.xlu1 %1588  ;;  %v1421_v40 = vpop.permute.xlu0 %1420 }
 0xcad   :  { %3016 = vmatpush3.xpose.msk.msra.mxu1 %vm210_vm2, %v1421_v40  ;;  %3026 = vmatpush3.xpose.msk.msra.mxu0 %vm210_vm2, %v1589_v39 }
 0xcae   :  { %3035 = vmatprep.subr.mxu0 %v3314_v36  ;;  %3020 = vmatprep.subr.mxu1 %v3314_v36 }
 0xcb0   :  { %v1587_v42 = vpop.permute.xlu1 %1586  ;;  %3018 = vmatmul.mubr.msk.f32.vlgmr.msra.gmra.mrb[14].mxu1 %vm210_vm2, %v3677_v37  ;;  %v1928_v43 = vpop.permute.xlu0 %1927 }
 0xcb1   :  { %3028 = vmatmul.mubr.msk.f32.vlgmr.msra.gmra.mrb[12].mxu0 %vm210_vm2, %v1587_v42  ;;  %3022 = vmatprep.mubr.msk.f32.mxu1 %vm3315_vm1, %v3314_v36 }
 0xcb2   :  { %3037 = vmatprep.mubr.msk.f32.mxu0 %vm3315_vm1, %v3314_v36 }
 0xcb4   :  { %v1760_v41 = vpop.permute.xlu1 %1759 }
 0xcb5   :  { %3036 = vmatpush3.xpose.msk.msra.mxu0 %vm210_vm2, %v1760_v41 }
 0xcb6   :  { %3045 = vmatprep.subr.mxu0 %v3314_v36 }
 0xcb8   :  { %3038 = vmatmul.mubr.msk.f32.vlgmr.msra.gmra.mrb[14].mxu0 %vm210_vm2, %v3683_v38  ;;  %v1926_v44 = vpop.permute.xlu1 %1925 }
 0xcb9   :  { %3046 = vmatpush3.xpose.msk.msra.mxu0 %vm210_vm2, %v1928_v43  ;;  %3047 = vmatprep.mubr.msk.f32.mxu0 %vm3315_vm1, %v3314_v36 }
 0xcbc   :  { %3048 = vmatmul.mubr.msk.f32.vlgmr.msra.gmra.mrb[16].mxu0 %vm210_vm2, %v1926_v44 }
 0xd83   :  { %v1492_v46 = vpop.f32.mrb[14].mxu1 }
 0xd84   :  { %v1496_v48 = vmul.f32 0.25, %v1492_v46  ;;  %v3019_v49 = vpop.f32.mrb[15].mxu1  ;;  %v1660_v50 = vpop.f32.mrb[12].mxu0 }
 0xd85   :  { %v1664_v51 = vmul.f32 0.25, %v1660_v50  ;;  %v3029_v53 = vpop.f32.mrb[13].mxu0  ;;  %v2775_v49 = vld [vmem:[%s3898_s6 + $0x28] sm:$0xff] }
 0xd86   :  { %v1497_v54 = vadd.f32 %v1496_v48, %v3512_v52  ;;  %v2774_v48 = vld [vmem:[%s3898_s6 + $0x20] sm:$0xff]  ;;  %v2777_v53 = vld [vmem:[%s3898_s6 + $0x38] sm:$0xff] }
 0xd87   :  { %v1665_v55 = vadd.f32 %v1664_v51, %v3512_v52  ;;  %v3166_v50 = vpack.c.bf16 %v2775_v49, %v2774_v48  ;;  %v2776_v51 = vld [vmem:[%s3898_s6 + $0x30] sm:$0xff]  ;;  %v2801_v48 = vld [vmem:[%s3904_s12 + $0x78] sm:$0xff] }
 0xd88   :  { %v1498_v56 = vsel %vm291_vm3, %v1497_v54, -inf }
 0xd89   :  { %1499 = vmax.xlane.f32.xlu0 %v1498_v56  ;;  %v1666_v57 = vsel %vm291_vm3, %v1665_v55, -inf  ;;  %3167 = vmatprep.subr.bf16.mxu0 %v3166_v50 }
 0xd8a   :  { %1667 = vmax.xlane.f32.xlu1 %v1666_v57  ;;  %3169 = vmatpush3.bf16.msra.mxu0 %v3166_v50  ;;  %v2791_v50 = vld [vmem:[%s3903_s11 + $0x1] ss:$0 sm:$0xff] }
 0xd8b   :  { %v1831_v58 = vpop.f32.mrb[14].mxu0 }
 0xd8c   :  { %v1835_v59 = vmul.f32 0.25, %v1831_v58  ;;  %v3039_v60 = vpop.f32.mrb[15].mxu0 }
 0xd8e   :  { %v1836_v61 = vadd.f32 %v1835_v59, %v3518_v0 }
 0xd8f   :  { %v1999_v62 = vpop.f32.mrb[16].mxu0 }
 0xd90   :  { %v2003_v63 = vmul.f32 0.25, %v1999_v62  ;;  %v3049_v1 = vpop.f32.mrb[17].mxu0  ;;  %v1837_v2 = vsel %vm291_vm3, %v1836_v61, -inf }
 0xd91   :  { %1838 = vmax.xlane.f32.xlu0 %v1837_v2 }
 0xd92   :  { %v2004_v3 = vadd.f32 %v2003_v63, %v3518_v0 }
 0xd94   :  { %v2005_v52 = vsel %vm291_vm3, %v2004_v3, -inf }
 0xd95   :  { %2006 = vmax.xlane.f32.xlu0 %v2005_v52 }
 0xe16   :  { %v1500_v4 = vpop.xlane.xlu0 %1499 }
 0xe17   :  { %v1501_v5 = vsub.f32 %v1497_v54, %v1500_v4  ;;  %v1668_v6 = vpop.xlane.xlu1 %1667  ;;  %v3170_v54 = vpack.c.bf16 %v2777_v53, %v2776_v51 }
 0xe18   :  { %v1669_v7 = vsub.f32 %v1665_v55, %v1668_v6 }
 0xe19   :  { %v1502_v8 = vmul.f32 1.442695, %v1501_v5  ;;  %3171 = vmatprep.subr.bf16.mxu0 %v3170_v54 }
 0xe1a   :  { %v1670_v9 = vmul.f32 1.442695, %v1669_v7  ;;  %3173 = vmatpush3.bf16.msra.mxu0 %v3170_v54 }
 0xe1b   :  { %3256 = vpow2.f32 %v1502_v8 }
 0xe1c   :  { %3258 = vpow2.f32 %v1670_v9 }
 0xe1e   :  { %v1839_v10 = vpop.xlane.xlu0 %1838 }
 0xe1f   :  { %v1840_v11 = vsub.f32 %v1836_v61, %v1839_v10  ;;  %v2779_v61 = vld [vmem:[%s3899_s7 + $0x1] ss:$0 sm:$0xff] }
 0xe21   :  { %v1841_v47 = vmul.f32 1.442695, %v1840_v11 }
 0xe22   :  { %v2007_v16 = vpop.xlane.xlu0 %2006 }
 0xe23   :  { %3260 = vpow2.f32 %v1841_v47  ;;  %v2008_v17 = vsub.f32 %v2004_v3, %v2007_v16 }
 0xe25   :  { %v3257_v45 = vpop.eup %3256  ;;  %v2009_v18 = vmul.f32 1.442695, %v2008_v17 }
 0xe26   :  { %v3259_v12 = vpop.eup %3258  ;;  %v1504_v13 = vsel %vm291_vm3, %v3257_v45, 0.0 }
 0xe27   :  { %1505 = vadd.xlane.f32.xlu0 %v1504_v13  ;;  %v1672_v0 = vsel %vm291_vm3, %v3259_v12, 0.0  ;;  %3262 = vpow2.f32 %v2009_v18  ;;  %v2787_v13 = vld [vmem:[%s3902_s10 + $0x28] sm:$0xff] }
 0xe28   :  { %1673 = vadd.xlane.f32.xlu1 %v1672_v0 }
 0xe2d   :  { %v3261_v14 = vpop.eup %3260 }
 0xe2e   :  { %v1843_v15 = vsel %vm291_vm3, %v3261_v14, 0.0 }
 0xe2f   :  { %1844 = vadd.xlane.f32.xlu0 %v1843_v15  ;;  %v2789_v15 = vld [vmem:[%s3902_s10 + $0x38] sm:$0xff] }
 0xe31   :  { %v3263_v19 = vpop.eup %3262 }
 0xe32   :  { %v2011_v20 = vsel %vm291_vm3, %v3263_v19, 0.0 }
 0xe39   :  { %1677 = vrot.lane.b32.xlu1 %v3677_v37, %s3319_s21 }
 0xe3d   :  { %1848 = vrot.lane.b32.xlu1 %v3683_v38, %s3320_s1 }
 0xe45   :  { %1509 = vrot.lane.b32.xlu0 %v3677_v37, %s3320_s1 }
 0xe61   :  { %2012 = vadd.xlane.f32.xlu1 %v2011_v20 }
 0xe72   :  { %2016 = vrot.lane.b32.xlu1 %v3683_v38, %s3319_s21 }
 0xeb4   :  { %v1506_v21 = vpop.xlane.xlu0 %1505 }
 0xeb5   :  { %3264 = vrcp.f32 %v1506_v21  ;;  %v1674_v22 = vpop.xlane.xlu1 %1673 }
 0xeb6   :  { %3266 = vrcp.f32 %v1674_v22 }
 0xeb9   :  { %v1678_v24 = vpop.permute.xlu1 %1677 }
 0xebc   :  { %v1845_v23 = vpop.xlane.xlu0 %1844 }
 0xebd   :  { %3268 = vrcp.f32 %v1845_v23  ;;  %v1849_v28 = vpop.permute.xlu1 %1848 }
 0xebf   :  { %v3265_v35 = vpop.eup %3264 }
 0xec0   :  { %v1508_v33 = vmul.f32 %v3265_v35, %v3257_v45  ;;  %v1510_v25 = vpop.permute.xlu0 %1509  ;;  %v3267_v26 = vpop.eup %3266  ;;  %v2784_v35 = vld [vmem:[%s3900_s8 + $0x1] ss:$0 sm:$0xff] }
 0xec1   :  { %3021 = vmatpush3.msra.mxu1 %v1510_v25  ;;  %v1676_v27 = vmul.f32 %v3267_v26, %v3259_v12 }
 0xec2   :  { %3023 = vmatmul.mubr.msk.f32.vlgmr.msra.gmra.mrb[16].mxu1 %vm291_vm3, %v1508_v33  ;;  %3030 = vmatprep.subr.mxu1 %v3314_v36 }
 0xec3   :  { %3031 = vmatpush3.msra.mxu1 %v1678_v24  ;;  %3032 = vmatprep.mubr.msk.f32.mxu1 %vm3315_vm1, %v3314_v36  ;;  %v2785_v24 = vld [vmem:[%s3901_s9 + $0x1] ss:$0 sm:$0xff] }
 0xec4   :  { %3040 = vmatprep.subr.mxu1 %v3314_v36 }
 0xec6   :  { %3033 = vmatmul.mubr.msk.f32.vlgmr.msra.gmra.mrb[18].mxu1 %vm291_vm3, %v1676_v27 }
 0xec7   :  { %v3269_v31 = vpop.eup %3268  ;;  %3041 = vmatpush3.msra.mxu1 %v1849_v28  ;;  %3042 = vmatprep.mubr.msk.f32.mxu1 %vm3315_vm1, %v3314_v36 }
 0xec8   :  { %v1847_v32 = vmul.f32 %v3269_v31, %v3261_v14  ;;  %3050 = vmatprep.subr.mxu1 %v3314_v36  ;;  %v2788_v14 = vld [vmem:[%s3902_s10 + $0x30] sm:$0xff] }
 0xec9   :  { %v3178_v16 = vpack.c.bf16 %v2789_v15, %v2788_v14 }
 0xeca   :  { %3043 = vmatmul.mubr.msk.f32.vlgmr.msra.gmra.mrb[20].mxu1 %vm291_vm3, %v1847_v32 }
 0xecb   :  { %3052 = vmatprep.mubr.msk.f32.mxu1 %vm3315_vm1, %v3314_v36 }
 0xeee   :  { %v2013_v34 = vpop.xlane.xlu1 %2012 }
 0xeef   :  { %3270 = vrcp.f32 %v2013_v34  ;;  %v2794_v34 = vld [vmem:[%s3904_s12 + $0x40] sm:$0xff] }
 0xef2   :  { %v2017_v37 = vpop.permute.xlu1 %2016 }
 0xef3   :  { %3051 = vmatpush3.msra.mxu1 %v2017_v37  ;;  %v2795_v37 = vld [vmem:[%s3904_s12 + $0x48] sm:$0xff] }
 0xef9   :  { %v3271_v38 = vpop.eup %3270 }
 0xefa   :  { %v2015_v39 = vmul.f32 %v3271_v38, %v3263_v19  ;;  %v3182_v38 = vpack.c.bf16 %v2795_v37, %v2794_v34 }
 0xefc   :  { %3053 = vmatmul.mubr.msk.f32.vlgmr.msra.gmra.mrb[22].mxu1 %vm291_vm3, %v2015_v39  ;;  %3183 = vmatprep.subr.bf16.mxu0 %v3182_v38  ;;  %v2796_v39 = vld [vmem:[%s3904_s12 + $0x50] sm:$0xff] }
 0xf95   :  { %v1581_v40 = vpop.f32.mrb[16].mxu1 }
 0xf96   :  { %1585 = vst.msk [vmem:[#allocation2] sm:$0xff] %vm210_vm2, %v1581_v40  ;;  %v3024_v42 = vpop.f32.mrb[17].mxu1  ;;  %v2797_v40 = vld [vmem:[%s3904_s12 + $0x58] sm:$0xff] }
 0xf97   :  { %v3186_v42 = vpack.c.bf16 %v2797_v40, %v2796_v39 }
 0xf99   :  { %v1749_v41 = vpop.f32.mrb[18].mxu1 }
 0xf9a   :  { %1754 = vrot.lane.b32.xlu0 %v1749_v41, %s3321_s22  ;;  %v3034_v43 = vpop.f32.mrb[19].mxu1  ;;  %v2798_v41 = vld [vmem:[%s3904_s12 + $0x60] sm:$0xff] }
 0xf9b   :  { %v2799_v43 = vld [vmem:[%s3904_s12 + $0x68] sm:$0xff] }
 0xf9d   :  { %v1920_v44 = vpop.f32.mrb[20].mxu1 }
 0xf9e   :  { %1924 = vst.msk [vmem:[#allocation2 + $0x8] sm:$0xff] %vm210_vm2, %v1920_v44  ;;  %v3044_v46 = vpop.f32.mrb[21].mxu1  ;;  %v3190_v44 = vpack.c.bf16 %v2799_v43, %v2798_v41  ;;  %v2803_v41 = vld [vmem:[%s3905_s13 + $0x1] ss:$0 sm:$0xff] }
 0xf9f   :  { %v2800_v46 = vld [vmem:[%s3904_s12 + $0x70] sm:$0xff] }
 0xfa0   :  { %v3194_v49 = vpack.c.bf16 %v2801_v48, %v2800_v46 }
 0xfcf   :  { %v2088_v55 = vpop.f32.mrb[22].mxu1 }
 0xfd0   :  { %2093 = vrot.lane.b32.xlu1 %v2088_v55, %s3321_s22  ;;  %v3054_v56 = vpop.f32.mrb[23].mxu1 }
0x100c   :  { %v1755_v57 = vpop.permute.xlu0 %1754 }
0x100d   :  { %1757 = vst.msk [vmem:[#allocation2] sm:$0xff] %vm551_vm4, %v1755_v57 }
0x1014   :  { %v2097_v58 = vld [vmem:[#allocation2] sm:$0xff] }
0x1015   :  { %3063 = vmatprep.mubr.msk.f32.mxu0 %vm70_vm0, %v2097_v58 }
0x1042   :  { %v2094_v59 = vpop.permute.xlu1 %2093 }
0x1043   :  { %2096 = vst.msk [vmem:[#allocation2 + $0x8] sm:$0xff] %vm551_vm4, %v2094_v59 }
0x104a   :  { %v2098_v60 = vld [vmem:[#allocation2 + $0x8] sm:$0xff] }
0x104b   :  { %3064 = vmatmul.mubr.msk.f32.vlgmr.msra.gmra.mrb[18].mxu0 %vm70_vm0, %v2098_v60 }
0x104c   :  { %3185 = vmatpush3.bf16.msra.mxu0 %v3182_v38 }
0x104d   :  { %3187 = vmatprep.subr.bf16.mxu0 %v3186_v42 }
0x1050   :  { %3189 = vmatpush3.bf16.msra.mxu0 %v3186_v42 }
0x1051   :  { %3191 = vmatprep.subr.bf16.mxu0 %v3190_v44 }
0x1054   :  { %3193 = vmatpush3.bf16.msra.mxu0 %v3190_v44 }
0x1055   :  { %3195 = vmatprep.subr.bf16.mxu0 %v3194_v49 }
0x1058   :  { %3197 = vmatpush3.bf16.msra.mxu0 %v3194_v49 }
0x111e   :  { %v3065_v62 = vpop.f32.mrb[18].mxu0 }
0x111f   :  { %v2190_v63 = vadd.f32 %v3065_v62, %v2779_v61  ;;  %v2184_v1 = vpop.f32.mrb[19].mxu0 }
0x1120   :  { %v2185_v2 = vadd.f32 %v2779_v61, %v2184_v1 }
0x1121   :  { %v2194_v3 = vadd.f32 %v2190_v63, %v3666_v30 }
0x1122   :  { %v2193_v52 = vadd.f32 %v2185_v2, %v3664_v29  ;;  %v2786_v29 = vld [vmem:[%s3902_s10 + $0x20] sm:$0xff] }
0x1123   :  { %v2202_v4 = vsel %vm70_vm0, %v2194_v3, 0.0  ;;  %v3174_v0 = vpack.c.bf16 %v2787_v13, %v2786_v29 }
0x1124   :  { %2203 = vadd.xlane.f32.xlu1 %v2202_v4  ;;  %v2199_v5 = vsel %vm70_vm0, %v2193_v52, 0.0 }
0x1125   :  { %2200 = vadd.xlane.f32.xlu0 %v2199_v5  ;;  %3175 = vmatprep.subr.bf16.mxu1 %v3174_v0 }
0x1126   :  { %3177 = vmatpush3.bf16.msra.mxu1 %v3174_v0 }
0x1127   :  { %3179 = vmatprep.subr.bf16.mxu1 %v3178_v16 }
0x112a   :  { %3181 = vmatpush3.bf16.msra.mxu1 %v3178_v16 }
0x11b1   :  { %v2204_v6 = vpop.xlane.xlu1 %2203 }
0x11b2   :  { %v2206_v7 = vmul.f32 0.03125, %v2204_v6  ;;  %v2201_v8 = vpop.xlane.xlu0 %2200 }
0x11b3   :  { %v2205_v9 = vmul.f32 0.03125, %v2201_v8 }
0x11b4   :  { %v2208_v10 = vsub.f32 %v2194_v3, %v2206_v7 }
0x11b5   :  { %v2207_v11 = vsub.f32 %v2193_v52, %v2205_v9 }
0x11b6   :  { %v2210_v12 = vmul.f32 %v2208_v10, %v2208_v10 }
0x11b7   :  { %v2209_v47 = vmul.f32 %v2207_v11, %v2207_v11 }
0x11b8   :  { %v2214_v30 = vsel %vm70_vm0, %v2210_v12, 0.0 }
0x11b9   :  { %v2211_v45 = vsel %vm70_vm0, %v2209_v47, 0.0 }
0x11ba   :  { %2212 = vadd.xlane.f32.xlu0 %v2211_v45 }
0x11be   :  { %2215 = vadd.xlane.f32.xlu0 %v2214_v30 }
0x1247   :  { %v2213_v17 = vpop.xlane.xlu0 %2212 }
0x1248   :  { %v2217_v18 = vmul.f32 0.03125, %v2213_v17 }
0x124a   :  { %v2219_v19 = vadd.f32 1e-12, %v2217_v18 }
0x124b   :  { %v2216_v20 = vpop.xlane.xlu0 %2215 }
0x124c   :  { %3272 = vrsqrt.f32 %v2219_v19  ;;  %v2218_v21 = vmul.f32 0.03125, %v2216_v20 }
0x124e   :  { %v2220_v22 = vadd.f32 1e-12, %v2218_v21 }
0x1250   :  { %3274 = vrsqrt.f32 %v2220_v22 }
0x1256   :  { %v3273_v23 = vpop.eup %3272 }
0x1257   :  { %v2223_v33 = vmul.f32 %v3273_v23, %v2207_v11 }
0x1259   :  { %v2231_v25 = vmul.f32 %v2784_v35, %v2223_v33 }
0x125a   :  { %v3275_v26 = vpop.eup %3274 }
0x125b   :  { %v2224_v27 = vmul.f32 %v3275_v26, %v2208_v10  ;;  %v3792_v28 = vadd.f32 %v2785_v24, %v2231_v25 }
0x125d   :  { %v2232_v31 = vmul.f32 %v2784_v35, %v2224_v27  ;;  %3074 = vmatprep.mubr.msk.f32.mxu1 %vm70_vm0, %v3792_v28 }
0x125f   :  { %v3796_v32 = vadd.f32 %v2785_v24, %v2232_v31 }
0x1261   :  { %3075 = vmatmul.mubr.msk.f32.vlgmr.msra.gmra.mrb[24].mxu1 %vm70_vm0, %v3796_v32 }
0x1262   :  { %3104 = vmatprep.mubr.msk.f32.mxu1 %vm3315_vm1, %v3314_v36 }
0x1334   :  { %v3076_v51 = vpop.f32.mrb[24].mxu1 }
0x1335   :  { %v2332_v53 = vadd.f32 %v3076_v51, %v2791_v50  ;;  %v2326_v54 = vpop.f32.mrb[25].mxu1 }
0x1336   :  { %v2327_v55 = vadd.f32 %v2791_v50, %v2326_v54 }
0x1337   :  { %v2338_v56 = vmul.f32 0.70710677, %v2332_v53  ;;  %v2336_v39 = vmul.f32 0.5, %v2332_v53 }
0x1338   :  { %v2337_v57 = vmul.f32 0.70710677, %v2327_v55  ;;  %v2335_v37 = vmul.f32 0.5, %v2327_v55 }
0x1339   :  { %v2340_v58 = vand.u32 2147483647, %v2338_v56  ;;  %vm2380_vm8 = vcmp.ge.f32.partialorder %v2338_v56, 0.0 }
0x133a   :  { %v2339_v59 = vand.u32 2147483647, %v2337_v57  ;;  %vm2379_vm9 = vcmp.ge.f32.partialorder %v2337_v57, 0.0 }
0x133b   :  { %v2342_v60 = vmul.f32 0.3275911, %v2340_v58  ;;  %v2368_v1 = vsub.f32 0.0, %v2340_v58 }
0x133c   :  { %v2341_v61 = vmul.f32 0.3275911, %v2339_v59  ;;  %v2367_v2 = vsub.f32 0.0, %v2339_v59 }
0x133d   :  { %v2344_v62 = vadd.f32 1.0, %v2342_v60  ;;  %v2370_v52 = vmul.f32 %v2368_v1, %v2340_v58 }
0x133e   :  { %v2343_v63 = vadd.f32 1.0, %v2341_v61  ;;  %v2369_v6 = vmul.f32 %v2367_v2, %v2339_v59  ;;  %v2541_v2 = vld [vmem:[%s3908_s16 + $0x10] sm:$0xff] }
0x133f   :  { %3276 = vrcp.f32 %v2344_v62  ;;  %v2373_v9 = vmul.f32 1.442695, %v2370_v52  ;;  %v3322_v52 = vmov 0.0|0.0  }
0x1340   :  { %3278 = vrcp.f32 %v2343_v63  ;;  %v2371_v47 = vmul.f32 1.442695, %v2369_v6  ;;  %v2540_v63 = vld [vmem:[%s3908_s16 + $0x8] sm:$0xff]  ;;  %3198 = vmatprep.subr.bf16.mxu1 %v3322_v52 }
0x1341   :  { %3280 = vpow2.f32 %v2373_v9 }
0x1342   :  { %3282 = vpow2.f32 %v2371_v47  ;;  %v2808_v47 = vld [vmem:[%s3906_s14 + $0x1] ss:$0 sm:$0xff] }
0x1349   :  { %v3277_v3 = vpop.eup %3276 }
0x134a   :  { %v3279_v4 = vpop.eup %3278  ;;  %v2350_v5 = vmul.f32 1.0614054, %v3277_v3 }
0x134b   :  { %v2349_v7 = vmul.f32 1.0614054, %v3279_v4  ;;  %v3281_v20 = vpop.eup %3280 }
0x134c   :  { %v2352_v8 = vadd.f32 -1.4531521, %v2350_v5  ;;  %v3283_v22 = vpop.eup %3282 }
0x134d   :  { %v2351_v10 = vadd.f32 -1.4531521, %v2349_v7 }
0x134e   :  { %v2354_v11 = vmul.f32 %v3277_v3, %v2352_v8 }
0x134f   :  { %v2353_v45 = vmul.f32 %v3279_v4, %v2351_v10 }
0x1350   :  { %v2356_v12 = vadd.f32 1.4214138, %v2354_v11 }
0x1351   :  { %v2355_v30 = vadd.f32 1.4214138, %v2353_v45 }
0x1352   :  { %v2358_v29 = vmul.f32 %v3277_v3, %v2356_v12 }
0x1353   :  { %v2357_v13 = vmul.f32 %v3279_v4, %v2355_v30  ;;  %v2809_v30 = vld [vmem:[%s3907_s15 + $0x1] ss:$0 sm:$0xff] }
0x1354   :  { %v2360_v0 = vadd.f32 -0.28449672, %v2358_v29 }
0x1355   :  { %v2359_v14 = vadd.f32 -0.28449672, %v2357_v13 }
0x1356   :  { %v2362_v15 = vmul.f32 %v3277_v3, %v2360_v0 }
0x1357   :  { %v2361_v16 = vmul.f32 %v3279_v4, %v2359_v14 }
0x1358   :  { %v2364_v17 = vadd.f32 0.2548296, %v2362_v15 }
0x1359   :  { %v2363_v18 = vadd.f32 0.2548296, %v2361_v16 }
0x135a   :  { %v2366_v19 = vmul.f32 %v3277_v3, %v2364_v17  ;;  %v2542_v3 = vld [vmem:[%s3908_s16 + $0x18] sm:$0xff]  ;;  %v2624_v17 = vld [vmem:[%s3910_s18] sm:$0xff] }
0x135b   :  { %v2365_v21 = vmul.f32 %v3279_v4, %v2363_v18  ;;  %v3202_v4 = vpack.c.bf16 %v2542_v3, %v2541_v2  ;;  %v2625_v18 = vld [vmem:[%s3910_s18 + $0x8] sm:$0xff] }
0x135c   :  { %v2376_v23 = vmul.f32 %v3281_v20, %v2366_v19  ;;  %v2626_v19 = vld [vmem:[%s3910_s18 + $0x10] sm:$0xff]  ;;  %v3205_v20 = vpack.c.bf16 %v2625_v18, %v2624_v17 }
0x135d   :  { %v2375_v35 = vmul.f32 %v3283_v22, %v2365_v21  ;;  %v2627_v21 = vld [vmem:[%s3910_s18 + $0x18] sm:$0xff]  ;;  %s3323_s18 = smov [#allocation4]  }
0x135e   :  { %v2378_v33 = vsub.f32 1.0, %v2376_v23  ;;  %v3208_v22 = vpack.c.bf16 %v2627_v21, %v2626_v19  ;;  %s2716_s5 = sshll.u32 %s3323_s18, 4  ;;  %s2717_s5 = int_to_ptr.vmem [resolvable:$true] %s2716_s5 }
0x135f   :  { %v2377_v24 = vsub.f32 1.0, %v2375_v35  ;;  %p3295_p1 = scmp.lt.s32.totalorder %s2717_s5, %s2717_s5 }
0x1360   :  { %v2382_v25 = vsub.f32 0.0, %v2378_v33 }
0x1361   :  { %v2381_v26 = vsub.f32 0.0, %v2377_v24 }
0x1362   :  { %v2384_v27 = vsel %vm2380_vm8, %v2378_v33, %v2382_v25  ;;  %v2812_v25 = vld [vmem:[%s3911_s19] ss:$0 sm:$0xff] }
0x1363   :  { %v2386_v31 = vadd.f32 1.0, %v2384_v27  ;;  %v2383_v34 = vsel %vm2379_vm9, %v2377_v24, %v2381_v26 }
0x1364   :  { %v2385_v38 = vadd.f32 1.0, %v2383_v34 }
0x1365   :  { %v2388_v42 = vmul.f32 %v2386_v31, %v2336_v39 }
0x1366   :  { %v2387_v40 = vmul.f32 %v2385_v38, %v2335_v37 }
0x1368   :  { %3093 = vmatprep.mubr.msk.f32.mxu0 %vm1197_vm7, %v2387_v40 }
0x1369   :  { %3094 = vmatmul.mubr.msk.f32.vlgmr.msra.gmra.mrb[20].mxu0 %vm1197_vm7, %v2388_v42 }
0x143c   :  { %v3095_v43 = vpop.f32.mrb[20].mxu0 }
0x143d   :  { %v2484_v44 = vadd.f32 %v3095_v43, %v2803_v41  ;;  %v2478_v46 = vpop.f32.mrb[21].mxu0 }
0x143e   :  { %v2479_v48 = vadd.f32 %v2803_v41, %v2478_v46 }
0x143f   :  { %v2488_v49 = vadd.f32 %v2484_v44, %v3796_v32 }
0x1440   :  { %v2487_v50 = vadd.f32 %v2479_v48, %v3792_v28  ;;  %v2539_v28 = vld [vmem:[%s3908_s16] sm:$0xff] }
0x1441   :  { %v2496_v51 = vsel %vm70_vm0, %v2488_v49, 0.0  ;;  %v3199_v1 = vpack.c.bf16 %v2540_v63, %v2539_v28 }
0x1442   :  { %2497 = vadd.xlane.f32.xlu1 %v2496_v51  ;;  %v2493_v53 = vsel %vm70_vm0, %v2487_v50, 0.0 }
0x1443   :  { %2494 = vadd.xlane.f32.xlu0 %v2493_v53  ;;  %3200 = vmatpush3.bf16.msra.mxu1 %v3199_v1 }
0x1444   :  { %3201 = vmatprep.subr.bf16.mxu1 %v3322_v52 }
0x1447   :  { %3203 = vmatpush3.bf16.msra.mxu1 %v3202_v4 }
0x1448   :  { %3204 = vmatprep.subr.bf16.mxu1 %v3322_v52 }
0x14cf   :  { %v2498_v54 = vpop.xlane.xlu1 %2497 }
0x14d0   :  { %v2500_v55 = vmul.f32 0.03125, %v2498_v54  ;;  %v2495_v56 = vpop.xlane.xlu0 %2494 }
0x14d1   :  { %v2499_v57 = vmul.f32 0.03125, %v2495_v56 }
0x14d2   :  { %v2502_v58 = vsub.f32 %v2488_v49, %v2500_v55 }
0x14d3   :  { %v2501_v59 = vsub.f32 %v2487_v50, %v2499_v57 }
0x14d4   :  { %v2504_v60 = vmul.f32 %v2502_v58, %v2502_v58 }
0x14d5   :  { %v2503_v61 = vmul.f32 %v2501_v59, %v2501_v59 }
0x14d6   :  { %v2508_v62 = vsel %vm70_vm0, %v2504_v60, 0.0 }
0x14d7   :  { %2509 = vadd.xlane.f32.xlu1 %v2508_v62  ;;  %v2505_v32 = vsel %vm70_vm0, %v2503_v61, 0.0 }
0x14d8   :  { %2506 = vadd.xlane.f32.xlu0 %v2505_v32 }
0x1564   :  { %v2510_v5 = vpop.xlane.xlu1 %2509 }
0x1565   :  { %v2512_v6 = vmul.f32 0.03125, %v2510_v5  ;;  %v2507_v7 = vpop.xlane.xlu0 %2506 }
0x1566   :  { %v2511_v8 = vmul.f32 0.03125, %v2507_v7 }
0x1567   :  { %v2514_v9 = vadd.f32 1e-12, %v2512_v6 }
0x1568   :  { %v2513_v10 = vadd.f32 1e-12, %v2511_v8 }
0x1569   :  { %3284 = vrsqrt.f32 %v2514_v9 }
0x156a   :  { %3286 = vrsqrt.f32 %v2513_v10 }
0x1573   :  { %v3285_v11 = vpop.eup %3284 }
0x1574   :  { %v3287_v45 = vpop.eup %3286  ;;  %v2518_v12 = vmul.f32 %v3285_v11, %v2502_v58 }
0x1575   :  { %v2517_v29 = vmul.f32 %v3287_v45, %v2501_v59 }
0x1576   :  { %v2526_v13 = vmul.f32 %v2808_v47, %v2518_v12 }
0x1577   :  { %v2525_v0 = vmul.f32 %v2808_v47, %v2517_v29 }
0x1578   :  { %v2534_v14 = vadd.f32 %v2809_v30, %v2526_v13 }
0x1579   :  { %v2533_v15 = vadd.f32 %v2809_v30, %v2525_v0 }
0x157a   :  { %2537 = vst.msk [vmem:[#allocation3 + $0x1] sm:$0x1] %vm2535_vm10, %v2534_v14 }
0x157b   :  { %2536 = vst.msk [vmem:[#allocation3] sm:$0x1] %vm2535_vm10, %v2533_v15 }
0x1582   :  { %v2538_v16 = vld [vmem:[#allocation3] sm:$0x3] }
0x1583   :  { %3105 = vmatmul.mubr.msk.f32.vlgmr.msra.gmra.mrb[26].mxu1 %vm70_vm0, %v2538_v16 }
0x1584   :  { %3115 = vmatprep.mubr.msk.f32.mxu1 %vm3315_vm1, %v3314_v36  ;;  %3206 = vmatpush3.bf16.msra.mxu1 %v3205_v20  ;;  %v2810_v36 = vld [vmem:[%s3909_s17] ss:$0 sm:$0xff]  ;;  %s3290_s17 = scalar_lea.vmem %s2717_s5, 32 }
0x1585   :  { %3207 = vmatprep.subr.bf16.mxu1 %v3322_v52  ;;  %p3291_p0 = scmp.ne.s32.totalorder %s2717_s5, %s3290_s17  ;;  %p3296_p2 = scmp.lt.s32.totalorder %s3290_s17, %s3290_s17 }
0x1587   :  { %p3297_p3 = por %p3296_p2, %p3295_p1 }
0x1588   :  { %3209 = vmatpush3.bf16.msra.mxu1 %v3208_v22 }
0x1589   :  { %p3298_p4 = pnand %p3297_p3, %p3291_p0 }
0x1656   :  { %v2619_v23 = vpop.f32.mrb[26].mxu1 }
0x1657   :  { %v2620_v35 = vadd.f32 %v2810_v36, %v2619_v23  ;;  %v3106_v33 = vpop.f32.mrb[27].mxu1 }
0x1659   :  { %3288 = vtanh.f32 %v2620_v35 }
0x1663   :  { %v3289_v24 = vpop.eup %3288 }
0x1664   :  { %3116 = vmatmul.mubr.msk.f32.vlgmr.msra.gmra.mrb[28].mxu1 %vm70_vm0, %v3289_v24 }
0x1737   :  { %v2704_v26 = vpop.f32.mrb[28].mxu1 }
0x1738   :  { %v2705_v27 = vadd.f32 %v2812_v25, %v2704_v26  ;;  %v3117_v31 = vpop.f32.mrb[29].mxu1 }
0x173a   :  { %2709 = vst.msk [vmem:[#allocation4] sm:$0x3] %vm2708_vm11, %v2705_v27 }
0x173b   :  { %3301 = shalt.err (!%p3298_p4)
}
0x173c   :  { %s3302_s13 = scalar_lea.hbm %s3912_s20, 32 }
0x173d   :  { %p3303_p5 = scmp.ne.s32.totalorder %s3912_s20, %s3302_s13  ;;  %p3306_p6 = scmp.lt.u32.totalorder %s3302_s13, %s3912_s20 }
0x173f   :  { %p3308_p7 = pnand %p3306_p6, %p3303_p5 }
0x1741   :  { %3311 = shalt.err (!%p3308_p7)
}
0x1742   :  { %2719 = dma.vmem_to_hbm [thread:$0]  %s2717_s5, 32, %s3912_s20, [#allocation5]  }
0x1743   :  { %3312 = dma.done.wait [#allocation5], 32  }
0x1744   :  { %3313 = vsyncadd [#allocation5], 4294967264 }
0x1745   :  { %2723 = vsyncpa [#allocation5], 1 }

</bundles_post_ra>
